<compile_context>
chip_gen: v5e
topology: v5e:2x2
jax: 0.10.0
libtpu: 0.0.40
codegen_flags: <defaults>
</compile_context>

<pallas_src>
import jax
import jax.numpy as jnp
from jax.experimental import pallas as pl
from jax.experimental.pallas import tpu as pltpu

# TODO(synk): the pretrained vision/touch/audio CNN backbones (ResNet18,
# VGGish, DenseNet201, ...) are not re-implemented here; the kernel starts
# from backbone feature vectors. Dropout is identity in eval mode.

EPS = 1e-5          # PyTorch BatchNorm1d default eps
LEAKY_SLOPE = 0.01  # PyTorch LeakyReLU default negative_slope

VISION_DIM = 512    # resnet18
TOUCH_DIM = 512     # resnet18
AUDIO_DIM = 128     # vggish
HIDDEN = 128
EMBED = 32
NUM_CLASSES = 7
LANE = 128          # lane-dense padding width for narrow tensors
NEG_BIG = -1e30     # padded-logit-lane bias (f32 epilogue only; never bf16)


def _round_up(x, m):
    return (x + m - 1) // m * m


# ----------------------------------------------------------------------------
# Kernel
# ----------------------------------------------------------------------------
def spectrovision_kernel(
    xv_ref, xt_ref, xa_ref, y_ref,
    w1v_ref, b1v_ref, w1t_ref, b1t_ref, w1a_ref, b1a_ref,
    fv_ref, ft_ref, fa_ref, bc_ref, w2_ref, b2_ref,
    out_ref,
):
    cdt = fv_ref.dtype  # MXU compute dtype (f32 or bf16); epilogue stays f32

    def hidden(x_ref, w_ref, b_ref):
        # Cast features to the weight dtype in-kernel (no wrapper astype round
        # trip); Linear (BN folded into W/b) -> LeakyReLU with f32 epilogue.
        x = x_ref[...].astype(cdt)
        h = jnp.dot(x, w_ref[...], preferred_element_type=jnp.float32) + b_ref[...]
        h = jnp.where(h >= 0.0, h, LEAKY_SLOPE * h)
        return h.astype(cdt)

    hv = hidden(xv_ref, w1v_ref, b1v_ref)   # [TB, 128]
    ht = hidden(xt_ref, w1t_ref, b1t_ref)   # [TB, 128]
    ha = hidden(xa_ref, w1a_ref, b1a_ref)   # [TB, 128]

    # Classifier first Linear with the modality second Linears and its BN
    # folded in; fused matrices are zero-padded to 128 output lanes (padded
    # lanes are exactly zero), which replaces the feature concat.
    c = (jnp.dot(hv, fv_ref[...], preferred_element_type=jnp.float32)
         + jnp.dot(ht, ft_ref[...], preferred_element_type=jnp.float32)
         + jnp.dot(ha, fa_ref[...], preferred_element_type=jnp.float32)
         + bc_ref[...])                                               # [TB, 128]
    c = jnp.where(c >= 0.0, c, LEAKY_SLOPE * c).astype(cdt)

    # Final Linear: real logits in lanes 0..6; padded lanes carry -1e30 via the
    # fused bias, so no explicit lane mask is needed before the log-sum-exp.
    logits = jnp.dot(c, w2_ref[...],
                     preferred_element_type=jnp.float32) + b2_ref[...]  # [TB, 128]

    # Per-row CrossEntropy NLL (f32). Target logit picked with a lane-iota
    # compare against the int32 label column (no one-hot input).
    lane = jax.lax.broadcasted_iota(jnp.int32, logits.shape, 1)
    m = jnp.max(logits, axis=-1, keepdims=True)
    lse = m + jnp.log(jnp.sum(jnp.exp(logits - m), axis=-1, keepdims=True))
    tgt = jnp.sum(jnp.where(lane == y_ref[...], logits, 0.0),
                  axis=-1, keepdims=True)
    nll = lse - tgt                                                     # [TB, 1]

    # Single lane-dense store: logits in lanes 0..6, per-row NLL in lane 7.
    # (Padded batch rows are sliced off in the wrapper.)
    out_ref[...] = jnp.where(lane == NUM_CLASSES, nll, logits)


# ----------------------------------------------------------------------------
# Parameter construction (deterministic, PyTorch-default-style init).
# ----------------------------------------------------------------------------
def _linear_params(key, fan_in, fan_out):
    kw, kb = jax.random.split(key)
    bound = 1.0 / (fan_in ** 0.5)
    W = jax.random.uniform(kw, (fan_in, fan_out), jnp.float32, -bound, bound)
    b = jax.random.uniform(kb, (1, fan_out), jnp.float32, -bound, bound)
    return W, b


def _bn_params(dim):
    return (jnp.ones((1, dim), jnp.float32), jnp.zeros((1, dim), jnp.float32),
            jnp.zeros((1, dim), jnp.float32), jnp.ones((1, dim), jnp.float32))


def _mlp_params(key, feature_dim):
    k1, k2 = jax.random.split(key)
    W1, b1 = _linear_params(k1, feature_dim, HIDDEN)
    g, beta, mu, var = _bn_params(HIDDEN)
    W2, b2 = _linear_params(k2, HIDDEN, EMBED)
    return [W1, b1, g, beta, mu, var, W2, b2]


def make_params(key):
    kv, kt, ka, kc1, kc2 = jax.random.split(key, 5)
    vision = _mlp_params(kv, VISION_DIM)
    touch = _mlp_params(kt, TOUCH_DIM)
    audio = _mlp_params(ka, AUDIO_DIM)
    cW1, cb1 = _linear_params(kc1, 3 * EMBED, EMBED)
    cg, cbe, cmu, cvr = _bn_params(EMBED)
    cW2, cb2 = _linear_params(kc2, EMBED, NUM_CLASSES)
    return vision + touch + audio + [cW1, cb1, cg, cbe, cmu, cvr, cW2, cb2]


def fuse_params(params, compute_dtype=jnp.bfloat16):
    """One-time weight prep (zero per-step cost): fold eval-mode BatchNorms
    into the preceding Linears, fold each modality's second Linear into the
    classifier's first Linear, zero-pad narrow matrices to 128 lanes, and bake
    -1e30 into the padded logit lanes of the final bias (removes the in-kernel
    LSE mask)."""
    (vW1, vb1, vg, vbe, vmu, vvr, vW2, vb2,
     tW1, tb1, tg, tbe, tmu, tvr, tW2, tb2,
     aW1, ab1, ag, abe, amu, avr, aW2, ab2,
     cW1, cb1, cg, cbe, cmu, cvr, cW2, cb2) = params

    hi = jax.lax.Precision.HIGHEST

    def fold_bn(W, b, g, be, mu, var):
        s = g * jax.lax.rsqrt(var + EPS)
        return W * s, (b - mu) * s + be

    W1v, b1v = fold_bn(vW1, vb1, vg, vbe, vmu, vvr)
    W1t, b1t = fold_bn(tW1, tb1, tg, tbe, tmu, tvr)
    W1a, b1a = fold_bn(aW1, ab1, ag, abe, amu, avr)

    cs = cg * jax.lax.rsqrt(cvr + EPS)
    cW1v, cW1t, cW1a = cW1[:EMBED], cW1[EMBED:2 * EMBED], cW1[2 * EMBED:]
    Fv = jnp.matmul(vW2, cW1v, precision=hi) * cs        # [128, 32]
    Ft = jnp.matmul(tW2, cW1t, precision=hi) * cs
    Fa = jnp.matmul(aW2, cW1a, precision=hi) * cs
    bC = (cb1 + jnp.matmul(vb2, cW1v, precision=hi)
          + jnp.matmul(tb2, cW1t, precision=hi)
          + jnp.matmul(ab2, cW1a, precision=hi)
          - cmu) * cs + cbe                               # [1, 32]

    def pad_cols(x):
        return jnp.pad(x, ((0, 0), (0, LANE - x.shape[1])))

    W2p = jnp.pad(cW2, ((0, LANE - cW2.shape[0]), (0, LANE - cW2.shape[1])))
    # Final bias padded with -1e30 so padded logit lanes never win the max and
    # contribute exp(...) == 0 to the LSE (f32 epilogue only).
    b2p = jnp.full((1, LANE), NEG_BIG, jnp.float32).at[:, :NUM_CLASSES].set(cb2)

    cd = compute_dtype
    return dict(
        W1v=W1v.astype(cd), b1v=b1v, W1t=W1t.astype(cd), b1t=b1t,
        W1a=W1a.astype(cd), b1a=b1a,
        Fv=pad_cols(Fv).astype(cd), Ft=pad_cols(Ft).astype(cd),
        Fa=pad_cols(Fa).astype(cd), bC=pad_cols(bC),
        W2=W2p.astype(cd), b2=b2p,
    )


# ----------------------------------------------------------------------------
# Pallas wrapper.
# ----------------------------------------------------------------------------
_WEIGHT_ORDER = ("W1v", "b1v", "W1t", "b1t", "W1a", "b1a",
                 "Fv", "Ft", "Fa", "bC", "W2", "b2")


def _choose_tb(batch):
    """Batch tile: as large as possible (amortize per-step overhead, cap 512
    to stay well under every generation's default scoped-VMEM limit), while
    keeping >= 2 grid blocks whenever the batch allows (v7x megacore), and
    16-row aligned (bf16 sublane packing)."""
    SUB = 16
    MAX_TB = 512
    n_blocks = max(2, _round_up(batch, MAX_TB) // MAX_TB)
    tb = _round_up(-(-batch // n_blocks), SUB)
    return max(SUB, min(MAX_TB, tb))


@jax.jit
def spectrovision_forward(xv, xt, xa, labels, fused):
    B = xv.shape[0]
    TB = _choose_tb(B)
    B_pad = _round_up(B, TB)
    n_blocks = B_pad // TB

    def pad_rows(x):
        # Only materializes a copy when B is not a multiple of TB; features
        # keep their native dtype (cast to the MXU dtype happens in-kernel).
        if B_pad == B:
            return x
        return jnp.pad(x, ((0, B_pad - B), (0, 0)))

    xv_p, xt_p, xa_p = pad_rows(xv), pad_rows(xt), pad_rows(xa)
    y_p = pad_rows(labels.astype(jnp.int32).reshape(B, 1))   # [B_pad, 1] int32

    def row_spec(d):
        return pl.BlockSpec((TB, d), lambda i: (i, 0))

    def resident_spec(a):   # weights stay in VMEM across all grid steps
        return pl.BlockSpec(a.shape, lambda i: (0, 0))

    weights = [fused[k] for k in _WEIGHT_ORDER]
    operands = [xv_p, xt_p, xa_p, y_p] + weights
    in_specs = ([row_spec(VISION_DIM), row_spec(TOUCH_DIM),
                 row_spec(AUDIO_DIM), row_spec(1)]
                + [resident_spec(w) for w in weights])

    out_slab = pl.pallas_call(
        spectrovision_kernel,
        grid=(n_blocks,),
        out_shape=jax.ShapeDtypeStruct((B_pad, LANE), jnp.float32),
        in_specs=in_specs,
        out_specs=pl.BlockSpec((TB, LANE), lambda i: (i, 0)),
        compiler_params=pltpu.CompilerParams(
            dimension_semantics=("parallel",)),
    )(*operands)

    pred = out_slab[:B, :NUM_CLASSES]
    # Per-row NLL is packed in lane NUM_CLASSES; mean over real rows only.
    loss = jnp.sum(out_slab[:B, NUM_CLASSES]) / B
    return pred, loss


# ----------------------------------------------------------------------------
# Pure-JAX reference (original, unfused semantics).
# ----------------------------------------------------------------------------
def reference_forward(xv, xt, xa, labels, params):
    (vW1, vb1, vg, vbe, vmu, vvr, vW2, vb2,
     tW1, tb1, tg, tbe, tmu, tvr, tW2, tb2,
     aW1, ab1, ag, abe, amu, avr, aW2, ab2,
     cW1, cb1, cg, cbe, cmu, cvr, cW2, cb2) = params

    def mlp(x, W1, b1, g, be, mu, vr, W2, b2):
        h = x @ W1 + b1
        h = (h - mu) / jnp.sqrt(vr + EPS) * g + be
        h = jnp.where(h >= 0, h, LEAKY_SLOPE * h)
        return h @ W2 + b2

    feats = jnp.concatenate([
        mlp(xv, vW1, vb1, vg, vbe, vmu, vvr, vW2, vb2),
        mlp(xt, tW1, tb1, tg, tbe, tmu, tvr, tW2, tb2),
        mlp(xa, aW1, ab1, ag, abe, amu, avr, aW2, ab2),
    ], axis=1)
    h = feats @ cW1 + cb1
    h = (h - cmu) / jnp.sqrt(cvr + EPS) * cg + cbe
    h = jnp.where(h >= 0, h, LEAKY_SLOPE * h)
    logits = h @ cW2 + cb2
    logp = jax.nn.log_softmax(logits, axis=-1)
    loss = -jnp.mean(jnp.take_along_axis(logp, labels[:, None], axis=1))
    return logits, loss


if __name__ == "__main__":
    key = jax.random.PRNGKey(0)
    kxv, kxt, kxa, ky, kp = jax.random.split(key, 5)

    # B chosen to exercise a multi-block batch grid (2 blocks of 112 rows) and
    # the padded last block / sliced loss reduction.
    B = 200
    xv = jax.random.normal(kxv, (B, VISION_DIM), jnp.float32)   # resnet18 vision feats
    xt = jax.random.normal(kxt, (B, TOUCH_DIM), jnp.float32)    # resnet18 touch feats
    xa = jax.random.normal(kxa, (B, AUDIO_DIM), jnp.float32)    # vggish audio feats
    labels = jax.random.randint(ky, (B,), 0, NUM_CLASSES, jnp.int32)

    params = make_params(kp)
    ref_pred, ref_loss = reference_forward(xv, xt, xa, labels, params)

    # Full-precision path (fused weights kept in f32): tight check vs reference.
    pred32, loss32 = spectrovision_forward(xv, xt, xa, labels,
                                           fuse_params(params, jnp.float32))
    jax.block_until_ready((pred32, loss32))
    assert pred32.shape == (B, NUM_CLASSES)
    assert jnp.allclose(pred32, ref_pred, atol=5e-4, rtol=5e-4)
    assert jnp.allclose(loss32, ref_loss, atol=5e-4, rtol=5e-4)

    # bf16 MXU path (f32 accumulation, f32 epilogue): looser tolerance.
    pred16, loss16 = spectrovision_forward(xv, xt, xa, labels,
                                           fuse_params(params, jnp.bfloat16))
    jax.block_until_ready((pred16, loss16))
    assert pred16.shape == (B, NUM_CLASSES)
    assert jnp.allclose(pred16, ref_pred, atol=5e-2, rtol=5e-2)
    assert jnp.allclose(loss16, ref_loss, atol=5e-2, rtol=5e-2)

    print("KERNEL_OK")
</pallas_src>

<mosaic_0001>
module attributes {stable_mosaic.version = 11 : i64} {
  func.func @spectrovision_kernel(%arg0: i32, %arg1: memref<112x512xf32, #tpu.memory_space<vmem>>, %arg2: memref<112x512xf32, #tpu.memory_space<vmem>>, %arg3: memref<112x128xf32, #tpu.memory_space<vmem>>, %arg4: memref<112x1xi32, #tpu.memory_space<vmem>>, %arg5: memref<512x128xf32, #tpu.memory_space<vmem>>, %arg6: memref<1x128xf32, #tpu.memory_space<vmem>>, %arg7: memref<512x128xf32, #tpu.memory_space<vmem>>, %arg8: memref<1x128xf32, #tpu.memory_space<vmem>>, %arg9: memref<128x128xf32, #tpu.memory_space<vmem>>, %arg10: memref<1x128xf32, #tpu.memory_space<vmem>>, %arg11: memref<128x128xf32, #tpu.memory_space<vmem>>, %arg12: memref<128x128xf32, #tpu.memory_space<vmem>>, %arg13: memref<128x128xf32, #tpu.memory_space<vmem>>, %arg14: memref<1x128xf32, #tpu.memory_space<vmem>>, %arg15: memref<128x128xf32, #tpu.memory_space<vmem>>, %arg16: memref<1x128xf32, #tpu.memory_space<vmem>>, %arg17: memref<112x128xf32, #tpu.memory_space<vmem>>) attributes {dimension_semantics = [#tpu.dimension_semantics<parallel>], iteration_bounds = array<i64: 2>, scalar_prefetch = 0 : i64, scratch_operands = 0 : i64, tpu.core_type = #tpu.core_type<tc>, window_params = [{transform_indices = @transform_0, window_bounds = array<i64: 112, 512>}, {transform_indices = @transform_1, window_bounds = array<i64: 112, 512>}, {transform_indices = @transform_2, window_bounds = array<i64: 112, 128>}, {transform_indices = @transform_3, window_bounds = array<i64: 112, 1>}, {pipeline_mode = #tpu.pipeline_mode<synchronous>, transform_indices = @transform_4, window_bounds = array<i64: 512, 128>}, {pipeline_mode = #tpu.pipeline_mode<synchronous>, transform_indices = @transform_5, window_bounds = array<i64: 1, 128>}, {pipeline_mode = #tpu.pipeline_mode<synchronous>, transform_indices = @transform_6, window_bounds = array<i64: 512, 128>}, {pipeline_mode = #tpu.pipeline_mode<synchronous>, transform_indices = @transform_7, window_bounds = array<i64: 1, 128>}, {pipeline_mode = #tpu.pipeline_mode<synchronous>, transform_indices = @transform_8, window_bounds = array<i64: 128, 128>}, {pipeline_mode = #tpu.pipeline_mode<synchronous>, transform_indices = @transform_9, window_bounds = array<i64: 1, 128>}, {pipeline_mode = #tpu.pipeline_mode<synchronous>, transform_indices = @transform_10, window_bounds = array<i64: 128, 128>}, {pipeline_mode = #tpu.pipeline_mode<synchronous>, transform_indices = @transform_11, window_bounds = array<i64: 128, 128>}, {pipeline_mode = #tpu.pipeline_mode<synchronous>, transform_indices = @transform_12, window_bounds = array<i64: 128, 128>}, {pipeline_mode = #tpu.pipeline_mode<synchronous>, transform_indices = @transform_13, window_bounds = array<i64: 1, 128>}, {pipeline_mode = #tpu.pipeline_mode<synchronous>, transform_indices = @transform_14, window_bounds = array<i64: 128, 128>}, {pipeline_mode = #tpu.pipeline_mode<synchronous>, transform_indices = @transform_15, window_bounds = array<i64: 1, 128>}, {transform_indices = @transform_16, window_bounds = array<i64: 112, 128>}]} {
    %c0 = arith.constant 0 : index
    %c0_0 = arith.constant 0 : index
    %0 = vector.load %arg1[%c0, %c0_0] : memref<112x512xf32, #tpu.memory_space<vmem>>, vector<112x512xf32>
    %c0_1 = arith.constant 0 : index
    %c0_2 = arith.constant 0 : index
    %1 = vector.load %arg5[%c0_1, %c0_2] : memref<512x128xf32, #tpu.memory_space<vmem>>, vector<512x128xf32>
    %cst = arith.constant dense<0.000000e+00> : vector<112x128xf32>
    %2 = tpu.matmul %0, %1, %cst {dimension_numbers = #tpu.dot_dimension_numbers<[1], [0], [0], [1], [0, 0, 1, 1], [], []>} : vector<112x512xf32>, vector<512x128xf32>, vector<112x128xf32> -> vector<112x128xf32>
    %c0_3 = arith.constant 0 : index
    %c0_4 = arith.constant 0 : index
    %3 = vector.load %arg6[%c0_3, %c0_4] : memref<1x128xf32, #tpu.memory_space<vmem>>, vector<1x128xf32>
    %4 = vector.broadcast %3 : vector<1x128xf32> to vector<112x128xf32>
    %5 = arith.addf %2, %4 : vector<112x128xf32>
    %cst_5 = arith.constant 0.000000e+00 : f32
    %6 = vector.broadcast %cst_5 : f32 to vector<112x128xf32>
    %7 = arith.cmpf oge, %5, %6 : vector<112x128xf32>
    %cst_6 = arith.constant 0.00999999977 : f32
    %8 = vector.broadcast %cst_6 : f32 to vector<112x128xf32>
    %9 = arith.mulf %8, %5 : vector<112x128xf32>
    %10 = arith.select %7, %5, %9 : vector<112x128xi1>, vector<112x128xf32>
    %c0_7 = arith.constant 0 : index
    %c0_8 = arith.constant 0 : index
    %11 = vector.load %arg2[%c0_7, %c0_8] : memref<112x512xf32, #tpu.memory_space<vmem>>, vector<112x512xf32>
    %c0_9 = arith.constant 0 : index
    %c0_10 = arith.constant 0 : index
    %12 = vector.load %arg7[%c0_9, %c0_10] : memref<512x128xf32, #tpu.memory_space<vmem>>, vector<512x128xf32>
    %cst_11 = arith.constant dense<0.000000e+00> : vector<112x128xf32>
    %13 = tpu.matmul %11, %12, %cst_11 {dimension_numbers = #tpu.dot_dimension_numbers<[1], [0], [0], [1], [0, 0, 1, 1], [], []>} : vector<112x512xf32>, vector<512x128xf32>, vector<112x128xf32> -> vector<112x128xf32>
    %c0_12 = arith.constant 0 : index
    %c0_13 = arith.constant 0 : index
    %14 = vector.load %arg8[%c0_12, %c0_13] : memref<1x128xf32, #tpu.memory_space<vmem>>, vector<1x128xf32>
    %15 = vector.broadcast %14 : vector<1x128xf32> to vector<112x128xf32>
    %16 = arith.addf %13, %15 : vector<112x128xf32>
    %cst_14 = arith.constant 0.000000e+00 : f32
    %17 = vector.broadcast %cst_14 : f32 to vector<112x128xf32>
    %18 = arith.cmpf oge, %16, %17 : vector<112x128xf32>
    %cst_15 = arith.constant 0.00999999977 : f32
    %19 = vector.broadcast %cst_15 : f32 to vector<112x128xf32>
    %20 = arith.mulf %19, %16 : vector<112x128xf32>
    %21 = arith.select %18, %16, %20 : vector<112x128xi1>, vector<112x128xf32>
    %c0_16 = arith.constant 0 : index
    %c0_17 = arith.constant 0 : index
    %22 = vector.load %arg3[%c0_16, %c0_17] : memref<112x128xf32, #tpu.memory_space<vmem>>, vector<112x128xf32>
    %c0_18 = arith.constant 0 : index
    %c0_19 = arith.constant 0 : index
    %23 = vector.load %arg9[%c0_18, %c0_19] : memref<128x128xf32, #tpu.memory_space<vmem>>, vector<128x128xf32>
    %cst_20 = arith.constant dense<0.000000e+00> : vector<112x128xf32>
    %24 = tpu.matmul %22, %23, %cst_20 {dimension_numbers = #tpu.dot_dimension_numbers<[1], [0], [0], [1], [0, 0, 1, 1], [], []>} : vector<112x128xf32>, vector<128x128xf32>, vector<112x128xf32> -> vector<112x128xf32>
    %c0_21 = arith.constant 0 : index
    %c0_22 = arith.constant 0 : index
    %25 = vector.load %arg10[%c0_21, %c0_22] : memref<1x128xf32, #tpu.memory_space<vmem>>, vector<1x128xf32>
    %26 = vector.broadcast %25 : vector<1x128xf32> to vector<112x128xf32>
    %27 = arith.addf %24, %26 : vector<112x128xf32>
    %cst_23 = arith.constant 0.000000e+00 : f32
    %28 = vector.broadcast %cst_23 : f32 to vector<112x128xf32>
    %29 = arith.cmpf oge, %27, %28 : vector<112x128xf32>
    %cst_24 = arith.constant 0.00999999977 : f32
    %30 = vector.broadcast %cst_24 : f32 to vector<112x128xf32>
    %31 = arith.mulf %30, %27 : vector<112x128xf32>
    %32 = arith.select %29, %27, %31 : vector<112x128xi1>, vector<112x128xf32>
    %c0_25 = arith.constant 0 : index
    %c0_26 = arith.constant 0 : index
    %33 = vector.load %arg11[%c0_25, %c0_26] : memref<128x128xf32, #tpu.memory_space<vmem>>, vector<128x128xf32>
    %cst_27 = arith.constant dense<0.000000e+00> : vector<112x128xf32>
    %34 = tpu.matmul %10, %33, %cst_27 {dimension_numbers = #tpu.dot_dimension_numbers<[1], [0], [0], [1], [0, 0, 1, 1], [], []>} : vector<112x128xf32>, vector<128x128xf32>, vector<112x128xf32> -> vector<112x128xf32>
    %c0_28 = arith.constant 0 : index
    %c0_29 = arith.constant 0 : index
    %35 = vector.load %arg12[%c0_28, %c0_29] : memref<128x128xf32, #tpu.memory_space<vmem>>, vector<128x128xf32>
    %cst_30 = arith.constant dense<0.000000e+00> : vector<112x128xf32>
    %36 = tpu.matmul %21, %35, %cst_30 {dimension_numbers = #tpu.dot_dimension_numbers<[1], [0], [0], [1], [0, 0, 1, 1], [], []>} : vector<112x128xf32>, vector<128x128xf32>, vector<112x128xf32> -> vector<112x128xf32>
    %37 = arith.addf %34, %36 : vector<112x128xf32>
    %c0_31 = arith.constant 0 : index
    %c0_32 = arith.constant 0 : index
    %38 = vector.load %arg13[%c0_31, %c0_32] : memref<128x128xf32, #tpu.memory_space<vmem>>, vector<128x128xf32>
    %cst_33 = arith.constant dense<0.000000e+00> : vector<112x128xf32>
    %39 = tpu.matmul %32, %38, %cst_33 {dimension_numbers = #tpu.dot_dimension_numbers<[1], [0], [0], [1], [0, 0, 1, 1], [], []>} : vector<112x128xf32>, vector<128x128xf32>, vector<112x128xf32> -> vector<112x128xf32>
    %40 = arith.addf %37, %39 : vector<112x128xf32>
    %c0_34 = arith.constant 0 : index
    %c0_35 = arith.constant 0 : index
    %41 = vector.load %arg14[%c0_34, %c0_35] : memref<1x128xf32, #tpu.memory_space<vmem>>, vector<1x128xf32>
    %42 = vector.broadcast %41 : vector<1x128xf32> to vector<112x128xf32>
    %43 = arith.addf %40, %42 : vector<112x128xf32>
    %cst_36 = arith.constant 0.000000e+00 : f32
    %44 = vector.broadcast %cst_36 : f32 to vector<112x128xf32>
    %45 = arith.cmpf oge, %43, %44 : vector<112x128xf32>
    %cst_37 = arith.constant 0.00999999977 : f32
    %46 = vector.broadcast %cst_37 : f32 to vector<112x128xf32>
    %47 = arith.mulf %46, %43 : vector<112x128xf32>
    %48 = arith.select %45, %43, %47 : vector<112x128xi1>, vector<112x128xf32>
    %c0_38 = arith.constant 0 : index
    %c0_39 = arith.constant 0 : index
    %49 = vector.load %arg15[%c0_38, %c0_39] : memref<128x128xf32, #tpu.memory_space<vmem>>, vector<128x128xf32>
    %cst_40 = arith.constant dense<0.000000e+00> : vector<112x128xf32>
    %50 = tpu.matmul %48, %49, %cst_40 {dimension_numbers = #tpu.dot_dimension_numbers<[1], [0], [0], [1], [0, 0, 1, 1], [], []>} : vector<112x128xf32>, vector<128x128xf32>, vector<112x128xf32> -> vector<112x128xf32>
    %c0_41 = arith.constant 0 : index
    %c0_42 = arith.constant 0 : index
    %51 = vector.load %arg16[%c0_41, %c0_42] : memref<1x128xf32, #tpu.memory_space<vmem>>, vector<1x128xf32>
    %52 = vector.broadcast %51 : vector<1x128xf32> to vector<112x128xf32>
    %53 = arith.addf %50, %52 : vector<112x128xf32>
    %54 = tpu.iota {dimensions = array<i32: 1>} : vector<112x128xi32>
    %cst_43 = arith.constant dense<0xFF800000> : vector<112xf32>
    %55 = vector.multi_reduction <maximumf>, %53, %cst_43 [1] : vector<112x128xf32> to vector<112xf32>
    %56 = vector.shape_cast %55 : vector<112xf32> to vector<112x1xf32>
    %57 = vector.broadcast %56 : vector<112x1xf32> to vector<112x128xf32>
    %58 = arith.subf %53, %57 : vector<112x128xf32>
    %59 = math.exp %58 : vector<112x128xf32>
    %cst_44 = arith.constant dense<0.000000e+00> : vector<112xf32>
    %60 = vector.multi_reduction <add>, %59, %cst_44 [1] : vector<112x128xf32> to vector<112xf32>
    %61 = vector.shape_cast %60 : vector<112xf32> to vector<112x1xf32>
    %62 = math.log %61 : vector<112x1xf32>
    %63 = arith.addf %56, %62 : vector<112x1xf32>
    %c0_45 = arith.constant 0 : index
    %c0_46 = arith.constant 0 : index
    %64 = vector.load %arg4[%c0_45, %c0_46] : memref<112x1xi32, #tpu.memory_space<vmem>>, vector<112x1xi32>
    %65 = vector.broadcast %64 : vector<112x1xi32> to vector<112x128xi32>
    %66 = arith.cmpi eq, %54, %65 : vector<112x128xi32>
    %cst_47 = arith.constant 0.000000e+00 : f32
    %67 = vector.broadcast %cst_47 : f32 to vector<112x128xf32>
    %68 = arith.select %66, %53, %67 : vector<112x128xi1>, vector<112x128xf32>
    %cst_48 = arith.constant dense<0.000000e+00> : vector<112xf32>
    %69 = vector.multi_reduction <add>, %68, %cst_48 [1] : vector<112x128xf32> to vector<112xf32>
    %70 = vector.shape_cast %69 : vector<112xf32> to vector<112x1xf32>
    %71 = arith.subf %63, %70 : vector<112x1xf32>
    %c7_i32 = arith.constant 7 : i32
    %72 = vector.broadcast %c7_i32 : i32 to vector<112x128xi32>
    %73 = arith.cmpi eq, %54, %72 : vector<112x128xi32>
    %74 = vector.shape_cast %71 : vector<112x1xf32> to vector<112x1xf32>
    %75 = vector.broadcast %74 : vector<112x1xf32> to vector<112x128xf32>
    %76 = arith.select %73, %75, %53 : vector<112x128xi1>, vector<112x128xf32>
    %c0_49 = arith.constant 0 : index
    %c0_50 = arith.constant 0 : index
    %77 = vector.load %arg17[%c0_49, %c0_50] : memref<112x128xf32, #tpu.memory_space<vmem>>, vector<112x128xf32>
    tpu.vector_store %arg17[%c0_49, %c0_50], %76 {strides = array<i32>} : memref<112x128xf32, #tpu.memory_space<vmem>>, vector<112x128xf32>,
    return
  }
  func.func @transform_0(%arg0: i32) -> (i32, i32) {
    %c0_i32 = arith.constant 0 : i32
    %c0_i32_0 = arith.constant 0 : i32
    return %arg0, %c0_i32 : i32, i32
  }
  func.func @transform_1(%arg0: i32) -> (i32, i32) {
    %c0_i32 = arith.constant 0 : i32
    %c0_i32_0 = arith.constant 0 : i32
    return %arg0, %c0_i32 : i32, i32
  }
  func.func @transform_2(%arg0: i32) -> (i32, i32) {
    %c0_i32 = arith.constant 0 : i32
    %c0_i32_0 = arith.constant 0 : i32
    return %arg0, %c0_i32 : i32, i32
  }
  func.func @transform_3(%arg0: i32) -> (i32, i32) {
    %c0_i32 = arith.constant 0 : i32
    %c0_i32_0 = arith.constant 0 : i32
    return %arg0, %c0_i32 : i32, i32
  }
  func.func @transform_4(%arg0: i32) -> (i32, i32) {
    %c0_i32 = arith.constant 0 : i32
    %c0_i32_0 = arith.constant 0 : i32
    %c0_i32_1 = arith.constant 0 : i32
    return %c0_i32, %c0_i32_0 : i32, i32
  }
  func.func @transform_5(%arg0: i32) -> (i32, i32) {
    %c0_i32 = arith.constant 0 : i32
    %c0_i32_0 = arith.constant 0 : i32
    %c0_i32_1 = arith.constant 0 : i32
    return %c0_i32, %c0_i32_0 : i32, i32
  }
  func.func @transform_6(%arg0: i32) -> (i32, i32) {
    %c0_i32 = arith.constant 0 : i32
    %c0_i32_0 = arith.constant 0 : i32
    %c0_i32_1 = arith.constant 0 : i32
    return %c0_i32, %c0_i32_0 : i32, i32
  }
  func.func @transform_7(%arg0: i32) -> (i32, i32) {
    %c0_i32 = arith.constant 0 : i32
    %c0_i32_0 = arith.constant 0 : i32
    %c0_i32_1 = arith.constant 0 : i32
    return %c0_i32, %c0_i32_0 : i32, i32
  }
  func.func @transform_8(%arg0: i32) -> (i32, i32) {
    %c0_i32 = arith.constant 0 : i32
    %c0_i32_0 = arith.constant 0 : i32
    %c0_i32_1 = arith.constant 0 : i32
    return %c0_i32, %c0_i32_0 : i32, i32
  }
  func.func @transform_9(%arg0: i32) -> (i32, i32) {
    %c0_i32 = arith.constant 0 : i32
    %c0_i32_0 = arith.constant 0 : i32
    %c0_i32_1 = arith.constant 0 : i32
    return %c0_i32, %c0_i32_0 : i32, i32
  }
  func.func @transform_10(%arg0: i32) -> (i32, i32) {
    %c0_i32 = arith.constant 0 : i32
    %c0_i32_0 = arith.constant 0 : i32
    %c0_i32_1 = arith.constant 0 : i32
    return %c0_i32, %c0_i32_0 : i32, i32
  }
  func.func @transform_11(%arg0: i32) -> (i32, i32) {
    %c0_i32 = arith.constant 0 : i32
    %c0_i32_0 = arith.constant 0 : i32
    %c0_i32_1 = arith.constant 0 : i32
    return %c0_i32, %c0_i32_0 : i32, i32
  }
  func.func @transform_12(%arg0: i32) -> (i32, i32) {
    %c0_i32 = arith.constant 0 : i32
    %c0_i32_0 = arith.constant 0 : i32
    %c0_i32_1 = arith.constant 0 : i32
    return %c0_i32, %c0_i32_0 : i32, i32
  }
  func.func @transform_13(%arg0: i32) -> (i32, i32) {
    %c0_i32 = arith.constant 0 : i32
    %c0_i32_0 = arith.constant 0 : i32
    %c0_i32_1 = arith.constant 0 : i32
    return %c0_i32, %c0_i32_0 : i32, i32
  }
  func.func @transform_14(%arg0: i32) -> (i32, i32) {
    %c0_i32 = arith.constant 0 : i32
    %c0_i32_0 = arith.constant 0 : i32
    %c0_i32_1 = arith.constant 0 : i32
    return %c0_i32, %c0_i32_0 : i32, i32
  }
  func.func @transform_15(%arg0: i32) -> (i32, i32) {
    %c0_i32 = arith.constant 0 : i32
    %c0_i32_0 = arith.constant 0 : i32
    %c0_i32_1 = arith.constant 0 : i32
    return %c0_i32, %c0_i32_0 : i32, i32
  }
  func.func @transform_16(%arg0: i32) -> (i32, i32) {
    %c0_i32 = arith.constant 0 : i32
    %c0_i32_0 = arith.constant 0 : i32
    return %arg0, %c0_i32 : i32, i32
  }
}

</mosaic_0001>

<bundles_post_ra>
// kernel: spectrovision_forward.1
= control target key start
LH: loop header
LB: loop body
LE: loop exit
PB: predicated region body
PF: predicated region fallthrough
CT: control target
= control target key end

     0   :  { %s2534_s21 = smov 0   ;;  %s3852_s0 = inlined_call_operand.vmem [shape: f32[224,512], index: 0, kind: input, shape index: {}]   ;;  %s3853_s1 = inlined_call_operand.vmem [shape: f32[224,512], index: 1, kind: input, shape index: {}]   ;;  %s3854_s2 = inlined_call_operand.vmem [shape: f32[224,128], index: 2, kind: input, shape index: {}]   ;;  %s3855_s3 = inlined_call_operand.vmem [shape: s32[224,1], index: 3, kind: input, shape index: {}]   ;;  %s3856_s4 = inlined_call_operand.vmem [shape: f32[512,128], index: 4, kind: input, shape index: {}]   ;;  %s3857_s5 = inlined_call_operand.vmem [shape: f32[1,128], index: 5, kind: input, shape index: {}]   ;;  %s3858_s6 = inlined_call_operand.vmem [shape: f32[512,128], index: 6, kind: input, shape index: {}]   ;;  %s3859_s7 = inlined_call_operand.vmem [shape: f32[1,128], index: 7, kind: input, shape index: {}]   ;;  %s3860_s8 = inlined_call_operand.vmem [shape: f32[128,128], index: 8, kind: input, shape index: {}]   ;;  %s3861_s9 = inlined_call_operand.vmem [shape: f32[1,128], index: 9, kind: input, shape index: {}]   ;;  %s3862_s10 = inlined_call_operand.vmem [shape: f32[128,128], index: 10, kind: input, shape index: {}]   ;;  %s3863_s11 = inlined_call_operand.vmem [shape: f32[128,128], index: 11, kind: input, shape index: {}]   ;;  %s3864_s12 = inlined_call_operand.vmem [shape: f32[128,128], index: 12, kind: input, shape index: {}]   ;;  %s3865_s13 = inlined_call_operand.vmem [shape: f32[1,128], index: 13, kind: input, shape index: {}]   ;;  %s3866_s14 = inlined_call_operand.vmem [shape: f32[128,128], index: 14, kind: input, shape index: {}]   ;;  %s3867_s15 = inlined_call_operand.vmem [shape: f32[1,128], index: 15, kind: input, shape index: {}]   ;;  %s3868_s16 = inlined_call_operand.vmem [shape: f32[224,128], index: 16, kind: output, shape index: {}]  }
   0x1   :  { %3869 = sst [smem:[#allocation2_spill]] %s3852_s0 }
   0x2 LB: > { %s2303_s22 = sadd.s32 4294967295, %s2446_s21   ;;  %p2307_p0 = scmp.ge.s32.totalorder %s2446_s21, 1  ;;  %s2446_s21 = sphi %s2534_s21, %s26_s21  }
   0x3   : > { %p498_p1 = scmp.lt.s32.totalorder %s2446_s21, 3 }
   0x5   : > { %p499_p2 = pnand %p2307_p0, %p498_p1 }
   0x6   : > { %s565_s24 = smul.u32 (!%p499_p2), 14, %s2303_s22  ;;  %s3870_s30 = sld [smem:[#allocation2_spill]] (!%p499_p2) }
   0x7   : > { %502 = sbr.rel (%p499_p2) target bundleno = 965 (0x3c5), region = 84 }
   0x8   : > { %p566_p3 = scmp.lt.s32.totalorder (!%p499_p2), %s565_s24, 27 }
   0xc   : > { %v668_v0 = vld [vmem:[%s3856_s4 + $0x78] sm:$0xff]  ;;  %v667_v1 = vld [vmem:[%s3856_s4 + $0x70] sm:$0xff]  ;;  %v666_v2 = vld [vmem:[%s3856_s4 + $0x68] sm:$0xff]  ;;  %s3872_s24 = smov (!%p566_p3, %s565_s24), 27 }
   0xd   : > { %2319 = vmatpush.msra.mxu1 %v668_v0  ;;  %2320 = vmatpush.msra.mxu2 %v668_v0  ;;  %v665_v3 = vld [vmem:[%s3856_s4 + $0x60] sm:$0xff]  ;;  %v664_v4 = vld [vmem:[%s3856_s4 + $0x58] sm:$0xff]  ;;  %v663_v5 = vld [vmem:[%s3856_s4 + $0x50] sm:$0xff]  ;;  %s2317_s23 = sshll.u32 %s3872_s24, 5  ;;  %s3084_s18 = sshll.u32 %s3872_s24, 3 }
   0xe   : > { %721 = vmatpush.msra.mxu0 %v668_v0  ;;  %2321 = vmatpush.msra.mxu3 %v668_v0  ;;  %v662_v6 = vld [vmem:[%s3856_s4 + $0x48] sm:$0xff]  ;;  %v661_v7 = vld [vmem:[%s3856_s4 + $0x40] sm:$0xff]  ;;  %v660_v8 = vld [vmem:[%s3856_s4 + $0x38] sm:$0xff]  ;;  %s2597_s0 = scalar_lea.vmem %s3870_s30, %s2317_s23  ;;  %s2809_s28 = scalar_lea.vmem %s3853_s1, %s2317_s23 }
   0xf   : > { %2322 = vmatpush.msra.mxu1 %v667_v1  ;;  %2323 = vmatpush.msra.mxu2 %v667_v1  ;;  %v659_v9 = vld [vmem:[%s3856_s4 + $0x30] sm:$0xff]  ;;  %v658_v10 = vld [vmem:[%s3856_s4 + $0x28] sm:$0xff]  ;;  %v657_v11 = vld [vmem:[%s3856_s4 + $0x20] sm:$0xff]  ;;  %s3100_s24 = scalar_lea.vmem %s3854_s2, %s3084_s18  ;;  %s3557_s22 = scalar_lea.vmem %s3855_s3, %s3084_s18 }
  0x10   : > { %722 = vmatpush.msra.mxu0 %v667_v1  ;;  %2324 = vmatpush.msra.mxu3 %v667_v1  ;;  %v656_v12 = vld [vmem:[%s3856_s4 + $0x18] sm:$0xff]  ;;  %v655_v13 = vld [vmem:[%s3856_s4 + $0x10] sm:$0xff]  ;;  %v654_v14 = vld [vmem:[%s3856_s4 + $0x8] sm:$0xff]  ;;  %s3773_s19 = scalar_lea.vmem %s3868_s16, %s3084_s18 }
  0x11   : > { %2325 = vmatpush.msra.mxu1 %v666_v2  ;;  %2326 = vmatpush.msra.mxu2 %v666_v2  ;;  %v653_v15 = vld [vmem:[%s3856_s4] sm:$0xff]  ;;  %v700_v18 = vld [vmem:[%s3856_s4 + $0x178] sm:$0xff]  ;;  %v699_v21 = vld [vmem:[%s3856_s4 + $0x170] sm:$0xff] }
  0x12   : > { %723 = vmatpush.msra.mxu0 %v666_v2  ;;  %2327 = vmatpush.msra.mxu3 %v666_v2  ;;  %v613_v16 = vld [vmem:[%s2597_s0 + $0x80] sm:$0xff]  ;;  %v684_v19 = vld [vmem:[%s3856_s4 + $0xf8] sm:$0xff]  ;;  %v683_v22 = vld [vmem:[%s3856_s4 + $0xf0] sm:$0xff] }
  0x13   : > { %2328 = vmatpush.msra.mxu1 %v665_v3  ;;  %2329 = vmatpush.msra.mxu2 %v665_v3  ;;  %v629_v17 = vld [vmem:[%s2597_s0 + $0x100] sm:$0xff]  ;;  %v716_v23 = vld [vmem:[%s3856_s4 + $0x1f8] sm:$0xff]  ;;  %v698_v25 = vld [vmem:[%s3856_s4 + $0x168] sm:$0xff] }
  0x14   : > { %724 = vmatpush.msra.mxu0 %v665_v3  ;;  %2330 = vmatpush.msra.mxu3 %v665_v3  ;;  %v597_v20 = vld [vmem:[%s2597_s0] sm:$0xff]  ;;  %v1070_v24 = vld [vmem:[%s3858_s6 + $0x78] sm:$0xff]  ;;  %v682_v26 = vld [vmem:[%s3856_s4 + $0xe8] sm:$0xff] }
  0x15   : > { %2331 = vmatpush.msra.mxu1 %v664_v4  ;;  %2332 = vmatpush.msra.mxu2 %v664_v4  ;;  %v715_v27 = vld [vmem:[%s3856_s4 + $0x1f0] sm:$0xff]  ;;  %v697_v29 = vld [vmem:[%s3856_s4 + $0x160] sm:$0xff]  ;;  %v714_v31 = vld [vmem:[%s3856_s4 + $0x1e8] sm:$0xff] }
  0x16   : > { %725 = vmatpush.msra.mxu0 %v664_v4  ;;  %2333 = vmatpush.msra.mxu3 %v664_v4  ;;  %v1069_v28 = vld [vmem:[%s3858_s6 + $0x70] sm:$0xff]  ;;  %v681_v30 = vld [vmem:[%s3856_s4 + $0xe0] sm:$0xff]  ;;  %v1068_v32 = vld [vmem:[%s3858_s6 + $0x68] sm:$0xff] }
  0x17   : > { %2334 = vmatpush.msra.mxu1 %v663_v5  ;;  %2335 = vmatpush.msra.mxu2 %v663_v5  ;;  %v617_v33 = vld [vmem:[%s2597_s0 + $0xa0] sm:$0xff]  ;;  %v680_v35 = vld [vmem:[%s3856_s4 + $0xd8] sm:$0xff]  ;;  %v679_v39 = vld [vmem:[%s3856_s4 + $0xd0] sm:$0xff] }
  0x18   : > { %726 = vmatpush.msra.mxu0 %v663_v5  ;;  %2336 = vmatpush.msra.mxu3 %v663_v5  ;;  %v633_v34 = vld [vmem:[%s2597_s0 + $0x120] sm:$0xff]  ;;  %v696_v36 = vld [vmem:[%s3856_s4 + $0x158] sm:$0xff]  ;;  %v695_v41 = vld [vmem:[%s3856_s4 + $0x150] sm:$0xff] }
  0x19   : > { %2337 = vmatpush.msra.mxu1 %v662_v6  ;;  %2338 = vmatpush.msra.mxu2 %v662_v6  ;;  %v713_v37 = vld [vmem:[%s3856_s4 + $0x1e0] sm:$0xff]  ;;  %v712_v42 = vld [vmem:[%s3856_s4 + $0x1d8] sm:$0xff]  ;;  %v694_v44 = vld [vmem:[%s3856_s4 + $0x148] sm:$0xff] }
  0x1a   : > { %727 = vmatpush.msra.mxu0 %v662_v6  ;;  %2339 = vmatpush.msra.mxu3 %v662_v6  ;;  %v1067_v38 = vld [vmem:[%s3858_s6 + $0x60] sm:$0xff]  ;;  %v1066_v43 = vld [vmem:[%s3858_s6 + $0x58] sm:$0xff]  ;;  %v678_v45 = vld [vmem:[%s3856_s4 + $0xc8] sm:$0xff] }
  0x1b   : > { %2340 = vmatpush.msra.mxu1 %v661_v7  ;;  %2341 = vmatpush.msra.mxu2 %v661_v7  ;;  %v601_v40 = vld [vmem:[%s2597_s0 + $0x20] sm:$0xff]  ;;  %v711_v46 = vld [vmem:[%s3856_s4 + $0x1d0] sm:$0xff]  ;;  %v710_v50 = vld [vmem:[%s3856_s4 + $0x1c8] sm:$0xff] }
  0x1c   : > { %728 = vmatpush.msra.mxu0 %v661_v7  ;;  %2342 = vmatpush.msra.mxu3 %v661_v7  ;;  %v1065_v47 = vld [vmem:[%s3858_s6 + $0x50] sm:$0xff]  ;;  %v693_v48 = vld [vmem:[%s3856_s4 + $0x140] sm:$0xff]  ;;  %v1064_v51 = vld [vmem:[%s3858_s6 + $0x48] sm:$0xff] }
  0x1d   : > { %2343 = vmatpush.msra.mxu1 %v660_v8  ;;  %2344 = vmatpush.msra.mxu2 %v660_v8  ;;  %v677_v49 = vld [vmem:[%s3856_s4 + $0xc0] sm:$0xff]  ;;  %v692_v54 = vld [vmem:[%s3856_s4 + $0x138] sm:$0xff]  ;;  %v691_v60 = vld [vmem:[%s3856_s4 + $0x130] sm:$0xff] }
  0x1e   : > { %729 = vmatpush.msra.mxu0 %v660_v8  ;;  %2345 = vmatpush.msra.mxu3 %v660_v8  ;;  %v621_v52 = vld [vmem:[%s2597_s0 + $0xc0] sm:$0xff]  ;;  %v676_v55 = vld [vmem:[%s3856_s4 + $0xb8] sm:$0xff]  ;;  %v675_v61 = vld [vmem:[%s3856_s4 + $0xb0] sm:$0xff] }
  0x1f   : > { %2346 = vmatpush.msra.mxu1 %v659_v9  ;;  %2347 = vmatpush.msra.mxu2 %v659_v9  ;;  %v637_v53 = vld [vmem:[%s2597_s0 + $0x140] sm:$0xff]  ;;  %v708_v62 = vld [vmem:[%s3856_s4 + $0x1b8] sm:$0xff]  ;;  %v690_v0 = vld [vmem:[%s3856_s4 + $0x128] sm:$0xff] }
  0x20   : > { %730 = vmatpush.msra.mxu0 %v659_v9  ;;  %2348 = vmatpush.msra.mxu3 %v659_v9  ;;  %v709_v56 = vld [vmem:[%s3856_s4 + $0x1c0] sm:$0xff]  ;;  %v1062_v63 = vld [vmem:[%s3858_s6 + $0x38] sm:$0xff]  ;;  %v674_v1 = vld [vmem:[%s3856_s4 + $0xa8] sm:$0xff] }
  0x21   : > { %2349 = vmatpush.msra.mxu1 %v658_v10  ;;  %2350 = vmatpush.msra.mxu2 %v658_v10  ;;  %v1063_v57 = vld [vmem:[%s3858_s6 + $0x40] sm:$0xff]  ;;  %v707_v2 = vld [vmem:[%s3856_s4 + $0x1b0] sm:$0xff]  ;;  %v706_v6 = vld [vmem:[%s3856_s4 + $0x1a8] sm:$0xff] }
  0x22   : > { %731 = vmatpush.msra.mxu0 %v658_v10  ;;  %2351 = vmatpush.msra.mxu3 %v658_v10  ;;  %v605_v58 = vld [vmem:[%s2597_s0 + $0x40] sm:$0xff]  ;;  %v1061_v3 = vld [vmem:[%s3858_s6 + $0x30] sm:$0xff]  ;;  %v1060_v7 = vld [vmem:[%s3858_s6 + $0x28] sm:$0xff] }
  0x23   : > { %2352 = vmatpush.msra.mxu1 %v657_v11  ;;  %2353 = vmatpush.msra.mxu2 %v657_v11  ;;  %v645_v59 = vld [vmem:[%s2597_s0 + $0x180] sm:$0xff]  ;;  %v688_v10 = vld [vmem:[%s3856_s4 + $0x118] sm:$0xff] }
  0x24   : > { %732 = vmatpush.msra.mxu0 %v657_v11  ;;  %2354 = vmatpush.msra.mxu3 %v657_v11  ;;  %v689_v4 = vld [vmem:[%s3856_s4 + $0x120] sm:$0xff]  ;;  %v672_v11 = vld [vmem:[%s3856_s4 + $0x98] sm:$0xff] }
  0x25   : > { %2355 = vmatpush.msra.mxu1 %v656_v12  ;;  %2356 = vmatpush.msra.mxu2 %v656_v12  ;;  %v673_v5 = vld [vmem:[%s3856_s4 + $0xa0] sm:$0xff] }
  0x26   : > { %733 = vmatpush.msra.mxu0 %v656_v12  ;;  %2357 = vmatpush.msra.mxu3 %v656_v12  ;;  %v625_v8 = vld [vmem:[%s2597_s0 + $0xe0] sm:$0xff] }
  0x27   : > { %2358 = vmatpush.msra.mxu1 %v655_v13  ;;  %2359 = vmatpush.msra.mxu2 %v655_v13  ;;  %v641_v9 = vld [vmem:[%s2597_s0 + $0x160] sm:$0xff] }
  0x28   : > { %734 = vmatpush.msra.mxu0 %v655_v13  ;;  %2360 = vmatpush.msra.mxu3 %v655_v13  ;;  %v705_v12 = vld [vmem:[%s3856_s4 + $0x1a0] sm:$0xff] }
  0x29   : > { %2361 = vmatpush.msra.mxu1 %v654_v14  ;;  %2362 = vmatpush.msra.mxu2 %v654_v14  ;;  %v1059_v13 = vld [vmem:[%s3858_s6 + $0x20] sm:$0xff] }
  0x2a   : > { %735 = vmatpush.msra.mxu0 %v654_v14  ;;  %2363 = vmatpush.msra.mxu3 %v654_v14  ;;  %v609_v14 = vld [vmem:[%s2597_s0 + $0x60] sm:$0xff] }
  0x2b   : > { %2364 = vmatpush.msra.mxu1 %v653_v15  ;;  %2365 = vmatpush.msra.mxu2 %v653_v15 }
  0x2c   : > { %749 = vmatmul.f32.vlgmr.msra.gmra.mxu1 %v613_v16  ;;  %761 = vmatmul.f32.vlgmr.msra.gmra.mxu2 %v629_v17  ;;  %v687_v16 = vld [vmem:[%s3856_s4 + $0x110] sm:$0xff] }
  0x2d   : > { %839 = vmatpush.msrb.mxu2 %v700_v18  ;;  %736 = vmatpush.msra.mxu0 %v653_v15  ;;  %v671_v17 = vld [vmem:[%s3856_s4 + $0x90] sm:$0xff]  ;;  %v704_v18 = vld [vmem:[%s3856_s4 + $0x198] sm:$0xff] }
  0x2e   : > { %780 = vmatpush.msrb.mxu1 %v684_v19  ;;  %2366 = vmatpush.msra.mxu3 %v653_v15  ;;  %v649_v15 = vld [vmem:[%s2597_s0 + $0x1a0] sm:$0xff]  ;;  %v1058_v19 = vld [vmem:[%s3858_s6 + $0x18] sm:$0xff] }
  0x2f   : > { %737 = vmatmul.f32.vlgmr.msra.gmra.mxu0 %v597_v20  ;;  %840 = vmatpush.msrb.mxu2 %v699_v21  ;;  %v686_v20 = vld [vmem:[%s3856_s4 + $0x108] sm:$0xff] }
  0x30   : > { %781 = vmatpush.msrb.mxu1 %v683_v22  ;;  %898 = vmatpush.msrb.mxu3 %v716_v23  ;;  %v670_v21 = vld [vmem:[%s3856_s4 + $0x88] sm:$0xff]  ;;  %v703_v22 = vld [vmem:[%s3856_s4 + $0x190] sm:$0xff] }
  0x31   : > { %1123 = vmatpush.msrb.mxu0 %v1070_v24  ;;  %841 = vmatpush.msrb.mxu2 %v698_v25  ;;  %v1057_v23 = vld [vmem:[%s3858_s6 + $0x10] sm:$0xff]  ;;  %v685_v24 = vld [vmem:[%s3856_s4 + $0x100] sm:$0xff] }
  0x32   : > { %782 = vmatpush.msrb.mxu1 %v682_v26  ;;  %899 = vmatpush.msrb.mxu3 %v715_v27  ;;  %v669_v25 = vld [vmem:[%s3856_s4 + $0x80] sm:$0xff]  ;;  %v702_v26 = vld [vmem:[%s3856_s4 + $0x188] sm:$0xff] }
  0x33   : > { %1124 = vmatpush.msrb.mxu0 %v1069_v28  ;;  %842 = vmatpush.msrb.mxu2 %v697_v29  ;;  %v1056_v27 = vld [vmem:[%s3858_s6 + $0x8] sm:$0xff]  ;;  %v599_v29 = vld [vmem:[%s2597_s0 + $0x10] sm:$0xff] }
  0x34   : > { %783 = vmatpush.msrb.mxu1 %v681_v30  ;;  %900 = vmatpush.msrb.mxu3 %v714_v31  ;;  %v598_v28 = vld [vmem:[%s2597_s0 + $0x8] sm:$0xff]  ;;  %v1102_v30 = vld [vmem:[%s3858_s6 + $0x178] sm:$0xff]  ;;  %v701_v31 = vld [vmem:[%s3856_s4 + $0x180] sm:$0xff] }
  0x35   : > { %1125 = vmatpush.msrb.mxu0 %v1068_v32  ;;  %752 = vmatmul.f32.gmra.mxu1 %v617_v33  ;;  %v1055_v32 = vld [vmem:[%s3858_s6] sm:$0xff]  ;;  %v600_v33 = vld [vmem:[%s2597_s0 + $0x18] sm:$0xff] }
  0x36   : > { %764 = vmatmul.f32.gmra.mxu2 %v633_v34  ;;  %784 = vmatpush.msrb.mxu1 %v680_v35  ;;  %v999_v34 = vld [vmem:[%s2809_s28] sm:$0xff]  ;;  %v1118_v35 = vld [vmem:[%s3858_s6 + $0x1f8] sm:$0xff] }
  0x37   : > { %843 = vmatpush.msrb.mxu2 %v696_v36  ;;  %901 = vmatpush.msrb.mxu3 %v713_v37  ;;  %v1086_v36 = vld [vmem:[%s3858_s6 + $0xf8] sm:$0xff] }
  0x38   : > { %1126 = vmatpush.msrb.mxu0 %v1067_v38  ;;  %785 = vmatpush.msrb.mxu1 %v679_v39  ;;  %v1430_v37 = vld [vmem:[%s3860_s8 + $0x78] sm:$0xff]  ;;  %v1101_v38 = vld [vmem:[%s3858_s6 + $0x170] sm:$0xff] }
  0x39   : > { %740 = vmatmul.f32.gmra.mxu0 %v601_v40  ;;  %844 = vmatpush.msrb.mxu2 %v695_v41  ;;  %v1117_v39 = vld [vmem:[%s3858_s6 + $0x1f0] sm:$0xff] }
  0x3a   : > { %902 = vmatpush.msrb.mxu3 %v712_v42  ;;  %1127 = vmatpush.msrb.mxu0 %v1066_v43  ;;  %v1085_v40 = vld [vmem:[%s3858_s6 + $0xf0] sm:$0xff]  ;;  %v1100_v42 = vld [vmem:[%s3858_s6 + $0x168] sm:$0xff] }
  0x3b   : > { %845 = vmatpush.msrb.mxu2 %v694_v44  ;;  %786 = vmatpush.msrb.mxu1 %v678_v45  ;;  %v1429_v41 = vld [vmem:[%s3860_s8 + $0x70] sm:$0xff]  ;;  %v1116_v43 = vld [vmem:[%s3858_s6 + $0x1e8] sm:$0xff] }
  0x3c   : > { %903 = vmatpush.msrb.mxu3 %v711_v46  ;;  %1128 = vmatpush.msrb.mxu0 %v1065_v47  ;;  %v602_v44 = vld [vmem:[%s2597_s0 + $0x28] sm:$0xff]  ;;  %v603_v45 = vld [vmem:[%s2597_s0 + $0x30] sm:$0xff] }
  0x3d   : > { %846 = vmatpush.msrb.mxu2 %v693_v48  ;;  %787 = vmatpush.msrb.mxu1 %v677_v49  ;;  %v1084_v46 = vld [vmem:[%s3858_s6 + $0xe8] sm:$0xff]  ;;  %v604_v48 = vld [vmem:[%s2597_s0 + $0x38] sm:$0xff]  ;;  %v1099_v49 = vld [vmem:[%s3858_s6 + $0x160] sm:$0xff] }
  0x3e   : > { %904 = vmatpush.msrb.mxu3 %v710_v50  ;;  %1129 = vmatpush.msrb.mxu0 %v1064_v51  ;;  %v1428_v47 = vld [vmem:[%s3860_s8 + $0x68] sm:$0xff]  ;;  %v1003_v50 = vld [vmem:[%s2809_s28 + $0x20] sm:$0xff] }
  0x3f   : > { %755 = vmatmul.f32.gmra.mxu1 %v621_v52  ;;  %767 = vmatmul.f32.gmra.mxu2 %v637_v53  ;;  %v1115_v51 = vld [vmem:[%s3858_s6 + $0x1e0] sm:$0xff] }
  0x40   : > { %847 = vmatpush.msrb.mxu2 %v692_v54  ;;  %788 = vmatpush.msrb.mxu1 %v676_v55  ;;  %v1083_v52 = vld [vmem:[%s3858_s6 + $0xe0] sm:$0xff]  ;;  %v1098_v54 = vld [vmem:[%s3858_s6 + $0x158] sm:$0xff] }
  0x41   : > { %905 = vmatpush.msrb.mxu3 %v709_v56  ;;  %1130 = vmatpush.msrb.mxu0 %v1063_v57  ;;  %v1427_v53 = vld [vmem:[%s3860_s8 + $0x60] sm:$0xff]  ;;  %v1114_v55 = vld [vmem:[%s3858_s6 + $0x1d8] sm:$0xff] }
  0x42   : > { %743 = vmatmul.f32.gmra.mxu0 %v605_v58  ;;  %773 = vmatmul.f32.vlgmr.msra.gmra.mxu3 %v645_v59  ;;  %v1082_v56 = vld [vmem:[%s3858_s6 + $0xd8] sm:$0xff]  ;;  %v1097_v58 = vld [vmem:[%s3858_s6 + $0x150] sm:$0xff] }
  0x43   : > { %848 = vmatpush.msrb.mxu2 %v691_v60  ;;  %789 = vmatpush.msrb.mxu1 %v675_v61  ;;  %v1426_v57 = vld [vmem:[%s3860_s8 + $0x58] sm:$0xff]  ;;  %v1113_v59 = vld [vmem:[%s3858_s6 + $0x1d0] sm:$0xff]  ;;  %v606_v60 = vld [vmem:[%s2597_s0 + $0x48] sm:$0xff] }
  0x44   : > { %906 = vmatpush.msrb.mxu3 %v708_v62  ;;  %1131 = vmatpush.msrb.mxu0 %v1062_v63  ;;  %v607_v61 = vld [vmem:[%s2597_s0 + $0x50] sm:$0xff] }
  0x45   : > { %849 = vmatpush.msrb.mxu2 %v690_v0  ;;  %790 = vmatpush.msrb.mxu1 %v674_v1  ;;  %v1081_v62 = vld [vmem:[%s3858_s6 + $0xd0] sm:$0xff]  ;;  %v608_v0 = vld [vmem:[%s2597_s0 + $0x58] sm:$0xff]  ;;  %v1096_v1 = vld [vmem:[%s3858_s6 + $0x148] sm:$0xff] }
  0x46   : > { %907 = vmatpush.msrb.mxu3 %v707_v2  ;;  %1132 = vmatpush.msrb.mxu0 %v1061_v3  ;;  %v1425_v63 = vld [vmem:[%s3860_s8 + $0x50] sm:$0xff]  ;;  %v1007_v2 = vld [vmem:[%s2809_s28 + $0x40] sm:$0xff]  ;;  %v1112_v3 = vld [vmem:[%s3858_s6 + $0x1c8] sm:$0xff] }
  0x47   : > { %850 = vmatpush.msrb.mxu2 %v689_v4  ;;  %791 = vmatpush.msrb.mxu1 %v673_v5  ;;  %v1080_v4 = vld [vmem:[%s3858_s6 + $0xc8] sm:$0xff] }
  0x48   : > { %908 = vmatpush.msrb.mxu3 %v706_v6  ;;  %1133 = vmatpush.msrb.mxu0 %v1060_v7  ;;  %v1424_v5 = vld [vmem:[%s3860_s8 + $0x48] sm:$0xff]  ;;  %v1095_v6 = vld [vmem:[%s3858_s6 + $0x140] sm:$0xff] }
  0x49   : > { %758 = vmatmul.f32.gmra.mxu1 %v625_v8  ;;  %770 = vmatmul.f32.gmra.mxu2 %v641_v9  ;;  %v1111_v7 = vld [vmem:[%s3858_s6 + $0x1c0] sm:$0xff] }
  0x4a   : > { %851 = vmatpush.msrb.mxu2 %v688_v10  ;;  %792 = vmatpush.msrb.mxu1 %v672_v11  ;;  %v1079_v8 = vld [vmem:[%s3858_s6 + $0xc0] sm:$0xff]  ;;  %v610_v10 = vld [vmem:[%s2597_s0 + $0x68] sm:$0xff]  ;;  %v611_v11 = vld [vmem:[%s2597_s0 + $0x70] sm:$0xff] }
  0x4b   : > { %909 = vmatpush.msrb.mxu3 %v705_v12  ;;  %1134 = vmatpush.msrb.mxu0 %v1059_v13  ;;  %v1423_v9 = vld [vmem:[%s3860_s8 + $0x40] sm:$0xff]  ;;  %v612_v12 = vld [vmem:[%s2597_s0 + $0x78] sm:$0xff] }
  0x4c   : > { %746 = vmatmul.f32.gmra.mxu0 %v609_v14  ;;  %776 = vmatmul.f32.gmra.mxu3 %v649_v15  ;;  %v1011_v13 = vld [vmem:[%s2809_s28 + $0x60] sm:$0xff]  ;;  %v1094_v14 = vld [vmem:[%s3858_s6 + $0x138] sm:$0xff] }
  0x4d   : > { %852 = vmatpush.msrb.mxu2 %v687_v16  ;;  %793 = vmatpush.msrb.mxu1 %v671_v17  ;;  %v1110_v15 = vld [vmem:[%s3858_s6 + $0x1b8] sm:$0xff] }
  0x4e   : > { %910 = vmatpush.msrb.mxu3 %v704_v18  ;;  %1135 = vmatpush.msrb.mxu0 %v1058_v19  ;;  %v1078_v16 = vld [vmem:[%s3858_s6 + $0xb8] sm:$0xff]  ;;  %v1093_v18 = vld [vmem:[%s3858_s6 + $0x130] sm:$0xff]  ;;  %v614_v19 = vld [vmem:[%s2597_s0 + $0x88] sm:$0xff] }
  0x4f   : > { %853 = vmatpush.msrb.mxu2 %v686_v20  ;;  %794 = vmatpush.msrb.mxu1 %v670_v21  ;;  %v1422_v17 = vld [vmem:[%s3860_s8 + $0x38] sm:$0xff]  ;;  %v615_v20 = vld [vmem:[%s2597_s0 + $0x90] sm:$0xff] }
  0x50   : > { %911 = vmatpush.msrb.mxu3 %v703_v22  ;;  %1136 = vmatpush.msrb.mxu0 %v1057_v23  ;;  %v616_v21 = vld [vmem:[%s2597_s0 + $0x98] sm:$0xff]  ;;  %v1015_v22 = vld [vmem:[%s2809_s28 + $0x80] sm:$0xff]  ;;  %v1109_v23 = vld [vmem:[%s3858_s6 + $0x1b0] sm:$0xff] }
  0x51   : > { %854 = vmatpush.msrb.mxu2 %v685_v24  ;;  %795 = vmatpush.msrb.mxu1 %v669_v25  ;;  %v1077_v24 = vld [vmem:[%s3858_s6 + $0xb0] sm:$0xff] }
  0x52   : > { %912 = vmatpush.msrb.mxu3 %v702_v26  ;;  %1137 = vmatpush.msrb.mxu0 %v1056_v27  ;;  %v1421_v25 = vld [vmem:[%s3860_s8 + $0x30] sm:$0xff]  ;;  %v1092_v26 = vld [vmem:[%s3858_s6 + $0x128] sm:$0xff] }
  0x53   : > { %796 = vmatmul.f32.vlgmr.msrb.gmra.mxu1 %v598_v28  ;;  %855 = vmatmul.f32.vlgmr.msrb.gmra.mxu2 %v599_v29  ;;  %v618_v27 = vld [vmem:[%s2597_s0 + $0xa8] sm:$0xff]  ;;  %v619_v28 = vld [vmem:[%s2597_s0 + $0xb0] sm:$0xff]  ;;  %v620_v29 = vld [vmem:[%s2597_s0 + $0xb8] sm:$0xff] }
  0x54   : > { %1241 = vmatpush.msra.mxu2 %v1102_v30  ;;  %913 = vmatpush.msrb.mxu3 %v701_v31  ;;  %v1019_v30 = vld [vmem:[%s2809_s28 + $0xa0] sm:$0xff]  ;;  %v1108_v31 = vld [vmem:[%s3858_s6 + $0x1a8] sm:$0xff] }
  0x55   : > { %1138 = vmatpush.msrb.mxu0 %v1055_v32  ;;  %914 = vmatmul.f32.vlgmr.msrb.gmra.mxu3 %v600_v33  ;;  %v1076_v32 = vld [vmem:[%s3858_s6 + $0xa8] sm:$0xff] }
  0x56   : > { %1139 = vmatmul.f32.vlgmr.msrb.gmra.mxu0 %v999_v34  ;;  %1300 = vmatpush.msra.mxu3 %v1118_v35  ;;  %v1420_v33 = vld [vmem:[%s3860_s8 + $0x28] sm:$0xff]  ;;  %v1091_v34 = vld [vmem:[%s3858_s6 + $0x120] sm:$0xff] }
  0x57   : > { %1182 = vmatpush.msra.mxu1 %v1086_v36  ;;  %1435 = vmatpush.msra.mxu0 %v1430_v37  ;;  %v1107_v35 = vld [vmem:[%s3858_s6 + $0x1a0] sm:$0xff]  ;;  %v622_v36 = vld [vmem:[%s2597_s0 + $0xc8] sm:$0xff]  ;;  %v623_v37 = vld [vmem:[%s2597_s0 + $0xd0] sm:$0xff] }
  0x58   : > { %1242 = vmatpush.msra.mxu2 %v1101_v38  ;;  %1301 = vmatpush.msra.mxu3 %v1117_v39  ;;  %v624_v38 = vld [vmem:[%s2597_s0 + $0xd8] sm:$0xff]  ;;  %v1023_v39 = vld [vmem:[%s2809_s28 + $0xc0] sm:$0xff] }
  0x59   : > { %1183 = vmatpush.msra.mxu1 %v1085_v40  ;;  %1436 = vmatpush.msra.mxu0 %v1429_v41  ;;  %v1075_v40 = vld [vmem:[%s3858_s6 + $0xa0] sm:$0xff] }
  0x5a   : > { %1243 = vmatpush.msra.mxu2 %v1100_v42  ;;  %1302 = vmatpush.msra.mxu3 %v1116_v43  ;;  %v1419_v41 = vld [vmem:[%s3860_s8 + $0x20] sm:$0xff]  ;;  %v1090_v42 = vld [vmem:[%s3858_s6 + $0x118] sm:$0xff] }
  0x5b   : > { %799 = vmatmul.f32.gmra.mxu1 %v602_v44  ;;  %858 = vmatmul.f32.gmra.mxu2 %v603_v45  ;;  %v1106_v43 = vld [vmem:[%s3858_s6 + $0x198] sm:$0xff]  ;;  %v626_v44 = vld [vmem:[%s2597_s0 + $0xe8] sm:$0xff]  ;;  %v627_v45 = vld [vmem:[%s2597_s0 + $0xf0] sm:$0xff] }
  0x5c   : > { %1184 = vmatpush.msra.mxu1 %v1084_v46  ;;  %1437 = vmatpush.msra.mxu0 %v1428_v47  ;;  %v628_v46 = vld [vmem:[%s2597_s0 + $0xf8] sm:$0xff]  ;;  %v1027_v47 = vld [vmem:[%s2809_s28 + $0xe0] sm:$0xff] }
  0x5d   : > { %917 = vmatmul.f32.gmra.mxu3 %v604_v48  ;;  %1244 = vmatpush.msra.mxu2 %v1099_v49  ;;  %v1074_v48 = vld [vmem:[%s3858_s6 + $0x98] sm:$0xff] }
  0x5e   : > { %1142 = vmatmul.f32.gmra.mxu0 %v1003_v50  ;;  %1303 = vmatpush.msra.mxu3 %v1115_v51  ;;  %v1418_v49 = vld [vmem:[%s3860_s8 + $0x18] sm:$0xff]  ;;  %v1089_v50 = vld [vmem:[%s3858_s6 + $0x110] sm:$0xff] }
  0x5f   : > { %1185 = vmatpush.msra.mxu1 %v1083_v52  ;;  %1438 = vmatpush.msra.mxu0 %v1427_v53  ;;  %v1105_v51 = vld [vmem:[%s3858_s6 + $0x190] sm:$0xff] }
  0x60   : > { %1245 = vmatpush.msra.mxu2 %v1098_v54  ;;  %1304 = vmatpush.msra.mxu3 %v1114_v55  ;;  %v1073_v52 = vld [vmem:[%s3858_s6 + $0x90] sm:$0xff]  ;;  %v630_v54 = vld [vmem:[%s2597_s0 + $0x108] sm:$0xff] }
  0x61   : > { %1186 = vmatpush.msra.mxu1 %v1082_v56  ;;  %1439 = vmatpush.msra.mxu0 %v1426_v57  ;;  %v1417_v53 = vld [vmem:[%s3860_s8 + $0x10] sm:$0xff]  ;;  %v632_v56 = vld [vmem:[%s2597_s0 + $0x118] sm:$0xff]  ;;  %v1031_v57 = vld [vmem:[%s2809_s28 + $0x100] sm:$0xff] }
  0x62   : > { %1246 = vmatpush.msra.mxu2 %v1097_v58  ;;  %1305 = vmatpush.msra.mxu3 %v1113_v59  ;;  %v631_v55 = vld [vmem:[%s2597_s0 + $0x110] sm:$0xff]  ;;  %v1088_v58 = vld [vmem:[%s3858_s6 + $0x108] sm:$0xff] }
  0x63   : > { %802 = vmatmul.f32.gmra.mxu1 %v606_v60  ;;  %861 = vmatmul.f32.gmra.mxu2 %v607_v61  ;;  %v1104_v59 = vld [vmem:[%s3858_s6 + $0x188] sm:$0xff] }
  0x64   : > { %1187 = vmatpush.msra.mxu1 %v1081_v62  ;;  %1440 = vmatpush.msra.mxu0 %v1425_v63  ;;  %v1072_v60 = vld [vmem:[%s3858_s6 + $0x88] sm:$0xff]  ;;  %v635_v63 = vld [vmem:[%s2597_s0 + $0x130] sm:$0xff] }
  0x65   : > { %920 = vmatmul.f32.gmra.mxu3 %v608_v0  ;;  %1247 = vmatpush.msra.mxu2 %v1096_v1  ;;  %v1416_v61 = vld [vmem:[%s3860_s8 + $0x8] sm:$0xff]  ;;  %v636_v0 = vld [vmem:[%s2597_s0 + $0x138] sm:$0xff]  ;;  %v1035_v1 = vld [vmem:[%s2809_s28 + $0x120] sm:$0xff] }
  0x66   : > { %1145 = vmatmul.f32.gmra.mxu0 %v1007_v2  ;;  %1306 = vmatpush.msra.mxu3 %v1112_v3  ;;  %v634_v62 = vld [vmem:[%s2597_s0 + $0x128] sm:$0xff]  ;;  %v1087_v2 = vld [vmem:[%s3858_s6 + $0x100] sm:$0xff] }
  0x67   : > { %1188 = vmatpush.msra.mxu1 %v1080_v4  ;;  %1441 = vmatpush.msra.mxu0 %v1424_v5  ;;  %v1103_v3 = vld [vmem:[%s3858_s6 + $0x180] sm:$0xff] }
  0x68   : > { %1248 = vmatpush.msra.mxu2 %v1095_v6  ;;  %1307 = vmatpush.msra.mxu3 %v1111_v7  ;;  %v1071_v4 = vld [vmem:[%s3858_s6 + $0x80] sm:$0xff]  ;;  %v638_v6 = vld [vmem:[%s2597_s0 + $0x148] sm:$0xff]  ;;  %v639_v7 = vld [vmem:[%s2597_s0 + $0x150] sm:$0xff] }
  0x69   : > { %1189 = vmatpush.msra.mxu1 %v1079_v8  ;;  %1442 = vmatpush.msra.mxu0 %v1423_v9  ;;  %v1415_v5 = vld [vmem:[%s3860_s8] sm:$0xff]  ;;  %v640_v8 = vld [vmem:[%s2597_s0 + $0x158] sm:$0xff] }
  0x6a   : > { %1249 = vmatpush.msra.mxu2 %v1094_v14  ;;  %1308 = vmatpush.msra.mxu3 %v1110_v15  ;;  %v1039_v9 = vld [vmem:[%s2809_s28 + $0x140] sm:$0xff] }
  0x6b   : > { %805 = vmatmul.f32.gmra.mxu1 %v610_v10  ;;  %864 = vmatmul.f32.gmra.mxu2 %v611_v11  ;;  %v642_v10 = vld [vmem:[%s2597_s0 + $0x168] sm:$0xff]  ;;  %v643_v11 = vld [vmem:[%s2597_s0 + $0x170] sm:$0xff]  ;;  %v1043_v14 = vld [vmem:[%s2809_s28 + $0x160] sm:$0xff] }
  0x6c   : > { %1190 = vmatpush.msra.mxu1 %v1078_v16  ;;  %1443 = vmatpush.msra.mxu0 %v1422_v17  ;;  %v646_v17 = vld [vmem:[%s2597_s0 + $0x188] sm:$0xff] }
  0x6d   : > { %923 = vmatmul.f32.gmra.mxu3 %v612_v12  ;;  %1250 = vmatpush.msra.mxu2 %v1093_v18  ;;  %v647_v18 = vld [vmem:[%s2597_s0 + $0x190] sm:$0xff] }
  0x6e   : > { %1148 = vmatmul.f32.gmra.mxu0 %v1011_v13  ;;  %1309 = vmatpush.msra.mxu3 %v1109_v23  ;;  %v644_v13 = vld [vmem:[%s2597_s0 + $0x178] sm:$0xff]  ;;  %v650_v23 = vld [vmem:[%s2597_s0 + $0x1a8] sm:$0xff] }
  0x6f   : > { %1191 = vmatpush.msra.mxu1 %v1077_v24  ;;  %1444 = vmatpush.msra.mxu0 %v1421_v25  ;;  %v651_v24 = vld [vmem:[%s2597_s0 + $0x1b0] sm:$0xff] }
  0x70   : > { %1251 = vmatpush.msra.mxu2 %v1092_v26  ;;  %1310 = vmatpush.msra.mxu3 %v1108_v31  ;;  %v652_v26 = vld [vmem:[%s2597_s0 + $0x1b8] sm:$0xff] }
  0x71   : > { %1192 = vmatpush.msra.mxu1 %v1076_v32  ;;  %1445 = vmatpush.msra.mxu0 %v1420_v33  ;;  %v1567_v32 = vld [vmem:[%s3863_s11 + $0x78] sm:$0xff]  ;;  %v1550_v33 = vld [vmem:[%s3862_s10 + $0x70] sm:$0xff] }
  0x72   : > { %1252 = vmatpush.msra.mxu2 %v1091_v34  ;;  %1311 = vmatpush.msra.mxu3 %v1107_v35  ;;  %v1000_v34 = vld [vmem:[%s2809_s28 + $0x8] sm:$0xff]  ;;  %v1001_v35 = vld [vmem:[%s2809_s28 + $0x10] sm:$0xff] }
  0x73   : > { %808 = vmatmul.f32.gmra.mxu1 %v614_v19  ;;  %867 = vmatmul.f32.gmra.mxu2 %v615_v20  ;;  %v648_v19 = vld [vmem:[%s2597_s0 + $0x198] sm:$0xff] }
  0x74   : > { %1193 = vmatpush.msra.mxu1 %v1075_v40  ;;  %1446 = vmatpush.msra.mxu0 %v1419_v41  ;;  %v1401_v40 = vld [vmem:[%s3100_s24] sm:$0xff] }
  0x75   : > { %926 = vmatmul.f32.gmra.mxu3 %v616_v21  ;;  %1253 = vmatpush.msra.mxu2 %v1090_v42  ;;  %v1047_v21 = vld [vmem:[%s2809_s28 + $0x180] sm:$0xff] }
  0x76   : > { %1151 = vmatmul.f32.gmra.mxu0 %v1015_v22  ;;  %1312 = vmatpush.msra.mxu3 %v1106_v43 }
  0x77   : > { %1194 = vmatpush.msra.mxu1 %v1074_v48  ;;  %1447 = vmatpush.msra.mxu0 %v1418_v49  ;;  %v1005_v48 = vld [vmem:[%s2809_s28 + $0x30] sm:$0xff] }
  0x78   : > { %1254 = vmatpush.msra.mxu2 %v1089_v50  ;;  %1313 = vmatpush.msra.mxu3 %v1105_v51  ;;  %v1699_v50 = vld [vmem:[%s3864_s12 + $0x68] sm:$0xff]  ;;  %v1006_v51 = vld [vmem:[%s2809_s28 + $0x38] sm:$0xff] }
  0x79   : > { %1195 = vmatpush.msra.mxu1 %v1073_v52  ;;  %1448 = vmatpush.msra.mxu0 %v1417_v53  ;;  %v1402_v52 = vld [vmem:[%s3100_s24 + $0x8] sm:$0xff] }
  0x7a   : > { %1255 = vmatpush.msra.mxu2 %v1088_v58  ;;  %1314 = vmatpush.msra.mxu3 %v1104_v59  ;;  %v1698_v58 = vld [vmem:[%s3864_s12 + $0x60] sm:$0xff] }
  0x7b   : > { %811 = vmatmul.f32.gmra.mxu1 %v618_v27  ;;  %870 = vmatmul.f32.gmra.mxu2 %v619_v28  ;;  %v1051_v27 = vld [vmem:[%s2809_s28 + $0x1a0] sm:$0xff]  ;;  %v1551_v28 = vld [vmem:[%s3862_s10 + $0x78] sm:$0xff] }
  0x7c   : > { %1196 = vmatpush.msra.mxu1 %v1072_v60  ;;  %1449 = vmatpush.msra.mxu0 %v1416_v61  ;;  %v1008_v61 = vld [vmem:[%s2809_s28 + $0x48] sm:$0xff] }
  0x7d   : > { %929 = vmatmul.f32.gmra.mxu3 %v620_v29  ;;  %1256 = vmatpush.msra.mxu2 %v1087_v2  ;;  %v1403_v2 = vld [vmem:[%s3100_s24 + $0x10] sm:$0xff] }
  0x7e   : > { %1154 = vmatmul.f32.gmra.mxu0 %v1019_v30  ;;  %1315 = vmatpush.msra.mxu3 %v1103_v3  ;;  %v1701_v30 = vld [vmem:[%s3864_s12 + $0x78] sm:$0xff]  ;;  %v1564_v3 = vld [vmem:[%s3863_s11 + $0x60] sm:$0xff] }
  0x7f   : > { %1197 = vmatpush.msra.mxu1 %v1071_v4  ;;  %1450 = vmatpush.msra.mxu0 %v1415_v5  ;;  %v1547_v4 = vld [vmem:[%s3862_s10 + $0x58] sm:$0xff] }
  0x80   : > { %1627 = vmatpush.msrb.mxu2 %v1551_v28  ;;  %1702 = vmatpush.msrb.mxu3 %v1701_v30 }
  0x81   : > { %1568 = vmatpush.msrb.mxu1 %v1567_v32  ;;  %v1016_v32 = vld [vmem:[%s2809_s28 + $0x88] sm:$0xff] }
  0x82   : > { %1628 = vmatpush.msrb.mxu2 %v1550_v33  ;;  %v1017_v33 = vld [vmem:[%s2809_s28 + $0x90] sm:$0xff] }
  0x83   : > { %814 = vmatmul.f32.gmra.mxu1 %v622_v36  ;;  %873 = vmatmul.f32.gmra.mxu2 %v623_v37  ;;  %v3105_v36 = vld [vmem:[%s3857_s5] ss:$0 sm:$0xff]  ;;  %v1700_v37 = vld [vmem:[%s3864_s12 + $0x70] sm:$0xff] }
  0x84   : > { %1703 = vmatpush.msrb.mxu3 %v1700_v37  ;;  %v1018_v37 = vld [vmem:[%s2809_s28 + $0x98] sm:$0xff] }
  0x85   : > { %932 = vmatmul.f32.gmra.mxu3 %v624_v38  ;;  %v1002_v38 = vld [vmem:[%s2809_s28 + $0x18] sm:$0xff] }
  0x86   : > { %1157 = vmatmul.f32.gmra.mxu0 %v1023_v39  ;;  %1704 = vmatpush.msrb.mxu3 %v1699_v50 }
  0x88   : > { %1705 = vmatpush.msrb.mxu3 %v1698_v58 }
  0x8b   : > { %817 = vmatmul.f32.gmra.mxu1 %v626_v44  ;;  %876 = vmatmul.f32.gmra.mxu2 %v627_v45  ;;  %v1566_v45 = vld [vmem:[%s3863_s11 + $0x70] sm:$0xff] }
  0x8c   : > { %1569 = vmatpush.msrb.mxu1 %v1566_v45  ;;  %v1695_v45 = vld [vmem:[%s3864_s12 + $0x48] sm:$0xff] }
  0x8d   : > { %935 = vmatmul.f32.gmra.mxu3 %v628_v46  ;;  %v1549_v46 = vld [vmem:[%s3862_s10 + $0x68] sm:$0xff] }
  0x8e   : > { %1160 = vmatmul.f32.gmra.mxu0 %v1027_v47  ;;  %v1004_v47 = vld [vmem:[%s2809_s28 + $0x28] sm:$0xff]  ;;  %1629 = vmatpush.msrb.mxu2 %v1549_v46 }
  0x93   : > { %820 = vmatmul.f32.gmra.mxu1 %v630_v54  ;;  %879 = vmatmul.f32.gmra.mxu2 %v631_v55  ;;  %v1565_v54 = vld [vmem:[%s3863_s11 + $0x68] sm:$0xff] }
  0x94   : > { %1570 = vmatpush.msrb.mxu1 %v1565_v54  ;;  %v1561_v54 = vld [vmem:[%s3863_s11 + $0x48] sm:$0xff] }
  0x95   : > { %938 = vmatmul.f32.gmra.mxu3 %v632_v56  ;;  %v1548_v56 = vld [vmem:[%s3862_s10 + $0x60] sm:$0xff] }
  0x96   : > { %1163 = vmatmul.f32.gmra.mxu0 %v1031_v57  ;;  %1630 = vmatpush.msrb.mxu2 %v1548_v56  ;;  %v1544_v56 = vld [vmem:[%s3862_s10 + $0x40] sm:$0xff] }
  0x97   : > { %1571 = vmatpush.msrb.mxu1 %v1564_v3 }
  0x98   : > { %1631 = vmatpush.msrb.mxu2 %v1547_v4 }
  0x9b   : > { %823 = vmatmul.f32.gmra.mxu1 %v634_v62  ;;  %882 = vmatmul.f32.gmra.mxu2 %v635_v63  ;;  %v1009_v62 = vld [vmem:[%s2809_s28 + $0x50] sm:$0xff]  ;;  %v1010_v63 = vld [vmem:[%s2809_s28 + $0x58] sm:$0xff] }
  0x9d   : > { %941 = vmatmul.f32.gmra.mxu3 %v636_v0 }
  0x9e   : > { %1166 = vmatmul.f32.gmra.mxu0 %v1035_v1 }
  0xa3   : > { %826 = vmatmul.f32.gmra.mxu1 %v638_v6  ;;  %885 = vmatmul.f32.gmra.mxu2 %v639_v7 }
  0xa5   : > { %944 = vmatmul.f32.gmra.mxu3 %v640_v8  ;;  %v1697_v8 = vld [vmem:[%s3864_s12 + $0x58] sm:$0xff] }
  0xa6   : > { %1169 = vmatmul.f32.gmra.mxu0 %v1039_v9  ;;  %1706 = vmatpush.msrb.mxu3 %v1697_v8  ;;  %v1543_v8 = vld [vmem:[%s3862_s10 + $0x38] sm:$0xff] }
  0xa9   : > { %v3053_v12 = vpop.f32.mrf.mxu1 }
  0xab   : > { %829 = vmatmul.f32.gmra.mxu1 %v642_v10  ;;  %888 = vmatmul.f32.gmra.mxu2 %v643_v11  ;;  %v1012_v11 = vld [vmem:[%s2809_s28 + $0x68] sm:$0xff] }
  0xac   : > { %v3057_v15 = vpop.f32.mrf.mxu0 }
  0xad   : > { %947 = vmatmul.f32.gmra.mxu3 %v644_v13  ;;  %v739_v0 = vadd.f32 %v3105_v36, %v3057_v15  ;;  %v1013_v13 = vld [vmem:[%s2809_s28 + $0x70] sm:$0xff]  ;;  %v1014_v15 = vld [vmem:[%s2809_s28 + $0x78] sm:$0xff] }
  0xae   : > { %1172 = vmatmul.f32.gmra.mxu0 %v1043_v14 }
  0xaf   : > { %v3059_v16 = vpop.f32.mrf.mxu2 }
  0xb2   : > { %v3064_v20 = vpop.f32.mrf.mxu1 }
  0xb3   : > { %832 = vmatmul.f32.gmra.mxu1 %v646_v17  ;;  %891 = vmatmul.f32.gmra.mxu2 %v647_v18 }
  0xb5   : > { %950 = vmatmul.f32.gmra.mxu3 %v648_v19  ;;  %v1404_v19 = vld [vmem:[%s3100_s24 + $0x18] sm:$0xff] }
  0xb6   : > { %1175 = vmatmul.f32.gmra.mxu0 %v1047_v21  ;;  %v3067_v22 = vpop.f32.mrf.mxu0  ;;  %v1563_v21 = vld [vmem:[%s3863_s11 + $0x58] sm:$0xff] }
  0xb7   : > { %v742_v17 = vadd.f32 %v3105_v36, %v3067_v22  ;;  %1572 = vmatpush.msrb.mxu1 %v1563_v21 }
  0xb9   : > { %v3071_v25 = vpop.f32.mrf.mxu2 }
  0xbb   : > { %835 = vmatmul.f32.gmra.mxu1 %v650_v23  ;;  %894 = vmatmul.f32.gmra.mxu2 %v651_v24  ;;  %v1546_v23 = vld [vmem:[%s3862_s10 + $0x50] sm:$0xff] }
  0xbc   : > { %v3078_v29 = vpop.f32.mrf.mxu1  ;;  %1632 = vmatpush.msrb.mxu2 %v1546_v23 }
  0xbd   : > { %953 = vmatmul.f32.gmra.mxu3 %v652_v26  ;;  %v1696_v26 = vld [vmem:[%s3864_s12 + $0x50] sm:$0xff] }
  0xbe   : > { %1178 = vmatmul.f32.gmra.mxu0 %v1051_v27  ;;  %1707 = vmatpush.msrb.mxu3 %v1696_v26  ;;  %v1692_v26 = vld [vmem:[%s3864_s12 + $0x30] sm:$0xff] }
  0xbf   : > { %v3086_v31 = vpop.f32.mrf.mxu0 }
  0xc0   : > { %1708 = vmatpush.msrb.mxu3 %v1695_v45  ;;  %v1691_v45 = vld [vmem:[%s3864_s12 + $0x28] sm:$0xff] }
  0xc2   : > { %v768_v39 = vpop.f32.mrf.mxu2 }
  0xc3   : > { %1198 = vmatmul.f32.vlgmr.msra.gmra.mxu1 %v1000_v34  ;;  %1257 = vmatmul.f32.vlgmr.msra.gmra.mxu2 %v1001_v35  ;;  %v3113_v41 = vadd.f32 %v3105_v36, %v768_v39  ;;  %v1562_v35 = vld [vmem:[%s3863_s11 + $0x50] sm:$0xff] }
  0xc4   : > { %1573 = vmatpush.msrb.mxu1 %v1562_v35  ;;  %v1541_v35 = vld [vmem:[%s3862_s10 + $0x28] sm:$0xff] }
  0xc5   : > { %1316 = vmatmul.f32.vlgmr.msra.gmra.mxu3 %v1002_v38  ;;  %v774_v42 = vpop.f32.mrf.mxu3  ;;  %v745_v38 = vadd.f32 %v3105_v36, %v3086_v31 }
  0xc6   : > { %1451 = vmatmul.f32.vlgmr.msra.gmra.mxu0 %v1401_v40  ;;  %v3115_v43 = vpop.f32.mrf.mxu1  ;;  %v3118_v44 = vadd.f32 %v3105_v36, %v774_v42  ;;  %v1405_v40 = vld [vmem:[%s3100_s24 + $0x20] sm:$0xff]  ;;  %v1545_v42 = vld [vmem:[%s3862_s10 + $0x48] sm:$0xff]  ;;  %1574 = vmatpush.msrb.mxu1 %v1561_v54 }
  0xc7   : > { %1633 = vmatpush.msrb.mxu2 %v1545_v42  ;;  %v1033_v42 = vld [vmem:[%s2809_s28 + $0x110] sm:$0xff] }
  0xc9   : > { %v3128_v49 = vpop.f32.mrf.mxu0  ;;  %1634 = vmatpush.msrb.mxu2 %v1544_v56 }
  0xca   : > { %v748_v58 = vadd.f32 %v3105_v36, %v3128_v49  ;;  %v1560_v49 = vld [vmem:[%s3863_s11 + $0x40] sm:$0xff] }
  0xcb   : > { %1201 = vmatmul.f32.gmra.mxu1 %v1004_v47  ;;  %1260 = vmatmul.f32.gmra.mxu2 %v1005_v48 }
  0xcc   : > { %v771_v53 = vpop.f32.mrf.mxu2  ;;  %1575 = vmatpush.msrb.mxu1 %v1560_v49  ;;  %1635 = vmatpush.msrb.mxu2 %v1543_v8 }
  0xcd   : > { %1319 = vmatmul.f32.gmra.mxu3 %v1006_v51  ;;  %v3139_v55 = vadd.f32 %v3105_v36, %v771_v53  ;;  %v1020_v51 = vld [vmem:[%s2809_s28 + $0xa8] sm:$0xff] }
  0xce   : > { %1454 = vmatmul.f32.gmra.mxu0 %v1402_v52  ;;  %v1021_v52 = vld [vmem:[%s2809_s28 + $0xb0] sm:$0xff] }
  0xcf   : > { %v777_v57 = vpop.f32.mrf.mxu3 }
  0xd0   : > { %v3148_v59 = vadd.f32 %v3105_v36, %v777_v57  ;;  %v797_v60 = vpop.f32.mrf.mxu1  ;;  %v1022_v57 = vld [vmem:[%s2809_s28 + $0xb8] sm:$0xff] }
  0xd1   : > { %v798_v5 = vadd.f32 %v797_v60, %v739_v0 }
  0xd3   : > { %v3155_v1 = vpop.f32.mrf.mxu0  ;;  %1204 = vmatmul.f32.gmra.mxu1 %v1008_v61  ;;  %1263 = vmatmul.f32.gmra.mxu2 %v1009_v62  ;;  %v1406_v61 = vld [vmem:[%s3100_s24 + $0x28] sm:$0xff]  ;;  %v1694_v62 = vld [vmem:[%s3864_s12 + $0x40] sm:$0xff] }
  0xd4   : > { %1709 = vmatpush.msrb.mxu3 %v1694_v62 }
  0xd5   : > { %1322 = vmatmul.f32.gmra.mxu3 %v1010_v63 }
  0xd6   : > { %1457 = vmatmul.f32.gmra.mxu0 %v1403_v2  ;;  %v856_v6 = vpop.f32.mrf.mxu2 }
  0xd7   : > { %v857_v7 = vadd.f32 %v856_v6, %v798_v5  ;;  %v1024_v5 = vld [vmem:[%s2809_s28 + $0xc8] sm:$0xff]  ;;  %v1025_v6 = vld [vmem:[%s2809_s28 + $0xd0] sm:$0xff] }
  0xd8   : > { %v800_v9 = vpop.f32.mrf.mxu1  ;;  %v915_v10 = vpop.f32.mrf.mxu3 }
  0xd9   : > { %v3169_v14 = vadd.f32 %v915_v10, %v857_v7  ;;  %v801_v24 = vadd.f32 %v800_v9, %v742_v17  ;;  %v1026_v9 = vld [vmem:[%s2809_s28 + $0xd8] sm:$0xff] }
  0xda   : > { %v1559_v17 = vld [vmem:[%s3863_s11 + $0x38] sm:$0xff] }
  0xdb   : > { %v3174_v18 = vpop.f32.mrf.mxu0  ;;  %1207 = vmatmul.f32.gmra.mxu1 %v1012_v11  ;;  %1266 = vmatmul.f32.gmra.mxu2 %v1013_v13  ;;  %v1407_v11 = vld [vmem:[%s3100_s24 + $0x30] sm:$0xff]  ;;  %v1693_v13 = vld [vmem:[%s3864_s12 + $0x38] sm:$0xff]  ;;  %vm957_vm0 = vcmp.ge.f32.partialorder %v3169_v14, 0.0 }
  0xdc   : > { %1710 = vmatpush.msrb.mxu3 %v1693_v13  ;;  %1576 = vmatpush.msrb.mxu1 %v1559_v17  ;;  %v1537_v13 = vld [vmem:[%s3862_s10 + $0x8] sm:$0xff]  ;;  %v1042_v17 = vld [vmem:[%s2809_s28 + $0x158] sm:$0xff] }
  0xdd   : > { %1325 = vmatmul.f32.gmra.mxu3 %v1014_v15 }
  0xde   : > { %1460 = vmatmul.f32.gmra.mxu0 %v1404_v19  ;;  %v859_v22 = vpop.f32.mrf.mxu2  ;;  %v1542_v19 = vld [vmem:[%s3862_s10 + $0x30] sm:$0xff]  ;;  %1711 = vmatpush.msrb.mxu3 %v1692_v26 }
  0xdf   : > { %v860_v27 = vadd.f32 %v859_v22, %v801_v24  ;;  %v1028_v24 = vld [vmem:[%s2809_s28 + $0xe8] sm:$0xff]  ;;  %v1029_v22 = vld [vmem:[%s2809_s28 + $0xf0] sm:$0xff]  ;;  %1636 = vmatpush.msrb.mxu2 %v1542_v19  ;;  %v1536_v19 = vld [vmem:[%s3862_s10] sm:$0xff] }
  0xe0   : > { %v803_v28 = vpop.f32.mrf.mxu1  ;;  %v918_v30 = vpop.f32.mrf.mxu3  ;;  %1712 = vmatpush.msrb.mxu3 %v1691_v45  ;;  %v1411_v26 = vld [vmem:[%s3100_s24 + $0x50] sm:$0xff]  ;;  %v1044_v45 = vld [vmem:[%s2809_s28 + $0x168] sm:$0xff] }
  0xe1   : > { %v3188_v34 = vadd.f32 %v918_v30, %v860_v27  ;;  %v804_v46 = vadd.f32 %v803_v28, %v745_v38  ;;  %v1030_v27 = vld [vmem:[%s2809_s28 + $0xf8] sm:$0xff]  ;;  %1637 = vmatpush.msrb.mxu2 %v1541_v35 }
  0xe2   : > { %v1408_v30 = vld [vmem:[%s3100_s24 + $0x38] sm:$0xff] }
  0xe3   : > { %v3196_v39 = vpop.f32.mrf.mxu0  ;;  %1210 = vmatmul.f32.gmra.mxu1 %v1016_v32  ;;  %1269 = vmatmul.f32.gmra.mxu2 %v1017_v33  ;;  %v1558_v33 = vld [vmem:[%s3863_s11 + $0x30] sm:$0xff]  ;;  %vm958_vm1 = vcmp.ge.f32.partialorder %v3188_v34, 0.0 }
  0xe4   : > { %1577 = vmatpush.msrb.mxu1 %v1558_v33 }
  0xe5   : > { %1328 = vmatmul.f32.gmra.mxu3 %v1018_v37 }
  0xe6   : > { %1463 = vmatmul.f32.gmra.mxu0 %v1405_v40  ;;  %v862_v31 = vpop.f32.mrf.mxu2  ;;  %v1032_v40 = vld [vmem:[%s2809_s28 + $0x108] sm:$0xff] }
  0xe7   : > { %v863_v47 = vadd.f32 %v862_v31, %v804_v46  ;;  %v1034_v46 = vld [vmem:[%s2809_s28 + $0x118] sm:$0xff] }
  0xe8   : > { %v806_v48 = vpop.f32.mrf.mxu1  ;;  %v921_v50 = vpop.f32.mrf.mxu3 }
  0xe9   : > { %v3207_v53 = vadd.f32 %v921_v50, %v863_v47  ;;  %v807_v63 = vadd.f32 %v806_v48, %v748_v58  ;;  %v1409_v47 = vld [vmem:[%s3100_s24 + $0x40] sm:$0xff]  ;;  %v1557_v48 = vld [vmem:[%s3863_s11 + $0x28] sm:$0xff]  ;;  %v1037_v58 = vld [vmem:[%s2809_s28 + $0x130] sm:$0xff] }
  0xea   : > { %1578 = vmatpush.msrb.mxu1 %v1557_v48  ;;  %v1046_v48 = vld [vmem:[%s2809_s28 + $0x178] sm:$0xff] }
  0xeb   : > { %v3218_v60 = vpop.f32.mrf.mxu0  ;;  %1213 = vmatmul.f32.gmra.mxu1 %v1020_v51  ;;  %1272 = vmatmul.f32.gmra.mxu2 %v1021_v52  ;;  %v1540_v51 = vld [vmem:[%s3862_s10 + $0x20] sm:$0xff]  ;;  %vm959_vm2 = vcmp.ge.f32.partialorder %v3207_v53, 0.0 }
  0xec   : > { %1638 = vmatpush.msrb.mxu2 %v1540_v51  ;;  %v1690_v52 = vld [vmem:[%s3864_s12 + $0x20] sm:$0xff]  ;;  %v766_v51 = vadd.f32 %v3105_v36, %v3071_v25 }
  0xed   : > { %1331 = vmatmul.f32.gmra.mxu3 %v1022_v57  ;;  %v1036_v57 = vld [vmem:[%s2809_s28 + $0x128] sm:$0xff] }
  0xee   : > { %1466 = vmatmul.f32.gmra.mxu0 %v1406_v61  ;;  %v865_v0 = vpop.f32.mrf.mxu2  ;;  %1713 = vmatpush.msrb.mxu3 %v1690_v52  ;;  %v1038_v61 = vld [vmem:[%s2809_s28 + $0x138] sm:$0xff] }
  0xef   : > { %v866_v2 = vadd.f32 %v865_v0, %v807_v63  ;;  %v1410_v63 = vld [vmem:[%s3100_s24 + $0x48] sm:$0xff]  ;;  %v1556_v0 = vld [vmem:[%s3863_s11 + $0x20] sm:$0xff] }
  0xf0   : > { %v3227_v3 = vpop.f32.mrf.mxu1  ;;  %v924_v4 = vpop.f32.mrf.mxu3  ;;  %1579 = vmatpush.msrb.mxu1 %v1556_v0 }
  0xf1   : > { %v3231_v7 = vadd.f32 %v924_v4, %v866_v2  ;;  %v1539_v2 = vld [vmem:[%s3862_s10 + $0x18] sm:$0xff]  ;;  %v1538_v4 = vld [vmem:[%s3862_s10 + $0x10] sm:$0xff] }
  0xf2   : > { %1639 = vmatpush.msrb.mxu2 %v1539_v2 }
  0xf3   : > { %v3237_v10 = vpop.f32.mrf.mxu0  ;;  %1216 = vmatmul.f32.gmra.mxu1 %v1024_v5  ;;  %1275 = vmatmul.f32.gmra.mxu2 %v1025_v6  ;;  %v1689_v5 = vld [vmem:[%s3864_s12 + $0x18] sm:$0xff]  ;;  %vm960_vm4 = vcmp.ge.f32.partialorder %v3231_v7, 0.0 }
  0xf4   : > { %1640 = vmatpush.msrb.mxu2 %v1538_v4  ;;  %1714 = vmatpush.msrb.mxu3 %v1689_v5  ;;  %v1048_v4 = vld [vmem:[%s2809_s28 + $0x188] sm:$0xff]  ;;  %v1049_v5 = vld [vmem:[%s2809_s28 + $0x190] sm:$0xff] }
  0xf5   : > { %1334 = vmatmul.f32.gmra.mxu3 %v1026_v9  ;;  %v1040_v9 = vld [vmem:[%s2809_s28 + $0x148] sm:$0xff] }
  0xf6   : > { %1469 = vmatmul.f32.gmra.mxu0 %v1407_v11  ;;  %v3243_v15 = vpop.f32.mrf.mxu2  ;;  %v1041_v11 = vld [vmem:[%s2809_s28 + $0x150] sm:$0xff]  ;;  %1641 = vmatpush.msrb.mxu2 %v1537_v13  ;;  %v1413_v13 = vld [vmem:[%s3100_s24 + $0x60] sm:$0xff] }
  0xf8   : > { %v3251_v21 = vpop.f32.mrf.mxu1  ;;  %v3253_v23 = vpop.f32.mrf.mxu3  ;;  %1642 = vmatpush.msrb.mxu2 %v1536_v19 }
  0xfb   : > { %v3261_v28 = vpop.f32.mrf.mxu0  ;;  %1219 = vmatmul.f32.gmra.mxu1 %v1028_v24  ;;  %1278 = vmatmul.f32.gmra.mxu2 %v1029_v22  ;;  %v763_v24 = vadd.f32 %v3105_v36, %v3059_v16 }
  0xfd   : > { %1337 = vmatmul.f32.gmra.mxu3 %v1030_v27  ;;  %v1555_v27 = vld [vmem:[%s3863_s11 + $0x18] sm:$0xff] }
  0xfe   : > { %1472 = vmatmul.f32.gmra.mxu0 %v1408_v30  ;;  %v3264_v32 = vpop.f32.mrf.mxu2  ;;  %v1688_v30 = vld [vmem:[%s3864_s12 + $0x10] sm:$0xff]  ;;  %1580 = vmatpush.msrb.mxu1 %v1555_v27  ;;  %v1552_v27 = vld [vmem:[%s3863_s11] sm:$0xff] }
  0xff   : > { %1715 = vmatpush.msrb.mxu3 %v1688_v30 }
 0x100   : > { %v3272_v37 = vpop.f32.mrf.mxu1  ;;  %v3274_v38 = vpop.f32.mrf.mxu3 }
 0x103   : > { %v3282_v31 = vpop.f32.mrf.mxu0  ;;  %1222 = vmatmul.f32.gmra.mxu1 %v1032_v40  ;;  %1281 = vmatmul.f32.gmra.mxu2 %v1033_v42 }
 0x105   : > { %1340 = vmatmul.f32.gmra.mxu3 %v1034_v46  ;;  %v1045_v46 = vld [vmem:[%s2809_s28 + $0x170] sm:$0xff] }
 0x106   : > { %1475 = vmatmul.f32.gmra.mxu0 %v1409_v47  ;;  %v3288_v50 = vpop.f32.mrf.mxu2  ;;  %v1554_v47 = vld [vmem:[%s3863_s11 + $0x10] sm:$0xff] }
 0x107   : > { %1581 = vmatpush.msrb.mxu1 %v1554_v47 }
 0x108   : > { %v3296_v54 = vpop.f32.mrf.mxu1  ;;  %v3298_v56 = vpop.f32.mrf.mxu3 }
 0x10b   : > { %v3303_v62 = vpop.f32.mrf.mxu0  ;;  %1225 = vmatmul.f32.gmra.mxu1 %v1036_v57  ;;  %1284 = vmatmul.f32.gmra.mxu2 %v1037_v58  ;;  %v1412_v57 = vld [vmem:[%s3100_s24 + $0x58] sm:$0xff]  ;;  %v1687_v58 = vld [vmem:[%s3864_s12 + $0x8] sm:$0xff] }
 0x10c   : > { %1716 = vmatpush.msrb.mxu3 %v1687_v58 }
 0x10d   : > { %1343 = vmatmul.f32.gmra.mxu3 %v1038_v61 }
 0x10e   : > { %1478 = vmatmul.f32.gmra.mxu0 %v1410_v63  ;;  %v3312_v49 = vpop.f32.mrf.mxu2 }
 0x110   : > { %v821_v6 = vpop.f32.mrf.mxu1  ;;  %v3320_v8 = vpop.f32.mrf.mxu3 }
 0x111   : > { %v822_v33 = vadd.f32 %v821_v6, %v763_v24  ;;  %v1553_v6 = vld [vmem:[%s3863_s11 + $0x8] sm:$0xff]  ;;  %v1686_v24 = vld [vmem:[%s3864_s12] sm:$0xff] }
 0x112   : > { %1582 = vmatpush.msrb.mxu1 %v1553_v6  ;;  %1717 = vmatpush.msrb.mxu3 %v1686_v24 }
 0x113   : > { %v3333_v22 = vpop.f32.mrf.mxu0  ;;  %1228 = vmatmul.f32.gmra.mxu1 %v1040_v9  ;;  %1287 = vmatmul.f32.gmra.mxu2 %v1041_v11  ;;  %v1050_v9 = vld [vmem:[%s2809_s28 + $0x198] sm:$0xff] }
 0x114   : > { %1583 = vmatpush.msrb.mxu1 %v1552_v27  ;;  %v3415_v27 = vld [vmem:[%s3859_s7] ss:$0 sm:$0xff] }
 0x115   : > { %1346 = vmatmul.f32.gmra.mxu3 %v1042_v17 }
 0x116   : > { %1481 = vmatmul.f32.gmra.mxu0 %v1411_v26  ;;  %v880_v16 = vpop.f32.mrf.mxu2 }
 0x117   : > { %v3342_v35 = vadd.f32 %v880_v16, %v822_v33  ;;  %v1052_v16 = vld [vmem:[%s2809_s28 + $0x1a8] sm:$0xff] }
 0x118   : > { %v824_v40 = vpop.f32.mrf.mxu1  ;;  %v3344_v42 = vpop.f32.mrf.mxu3 }
 0x119   : > { %v825_v61 = vadd.f32 %v824_v40, %v766_v51  ;;  %v1054_v40 = vld [vmem:[%s2809_s28 + $0x1b8] sm:$0xff] }
 0x11b   : > { %v3354_v52 = vpop.f32.mrf.mxu0  ;;  %1231 = vmatmul.f32.gmra.mxu1 %v1044_v45  ;;  %1290 = vmatmul.f32.gmra.mxu2 %v1045_v46  ;;  %v1414_v46 = vld [vmem:[%s3100_s24 + $0x68] sm:$0xff] }
 0x11d   : > { %1349 = vmatmul.f32.gmra.mxu3 %v1046_v48  ;;  %v971_v48 = vmul.f32 0.01, %v3169_v14 }
 0x11e   : > { %1484 = vmatmul.f32.gmra.mxu0 %v1412_v57  ;;  %v883_v63 = vpop.f32.mrf.mxu2 }
 0x11f   : > { %v3360_v0 = vadd.f32 %v883_v63, %v825_v61  ;;  %v985_v63 = vsel %vm957_vm0, %v3169_v14, %v971_v48 }
 0x120   : > { %v827_v2 = vpop.f32.mrf.mxu1  ;;  %v3362_v25 = vpop.f32.mrf.mxu3 }
 0x121   : > { %v828_v17 = vadd.f32 %v827_v2, %v3113_v41  ;;  %v1053_v41 = vld [vmem:[%s2809_s28 + $0x1b0] sm:$0xff] }
 0x123   : > { %v3370_v11 = vpop.f32.mrf.mxu0  ;;  %1234 = vmatmul.f32.gmra.mxu1 %v1048_v4  ;;  %1293 = vmatmul.f32.gmra.mxu2 %v1049_v5  ;;  %v972_v5 = vmul.f32 0.01, %v3188_v34 }
 0x125   : > { %1352 = vmatmul.f32.gmra.mxu3 %v1050_v9 }
 0x126   : > { %1487 = vmatmul.f32.gmra.mxu0 %v1413_v13  ;;  %v886_v19 = vpop.f32.mrf.mxu2 }
 0x127   : > { %v3377_v26 = vadd.f32 %v886_v19, %v828_v17  ;;  %v986_v17 = vsel %vm958_vm1, %v3188_v34, %v972_v5  ;;  %v974_v5 = vmul.f32 0.01, %v3231_v7 }
 0x128   : > { %v830_v30 = vpop.f32.mrf.mxu1  ;;  %v3382_v33 = vpop.f32.mrf.mxu3 }
 0x129   : > { %v831_v47 = vadd.f32 %v830_v30, %v3139_v55 }
 0x12b   : > { %v3387_v45 = vpop.f32.mrf.mxu0  ;;  %1237 = vmatmul.f32.gmra.mxu1 %v1052_v16  ;;  %1296 = vmatmul.f32.gmra.mxu2 %v1053_v41  ;;  %v3425_v41 = vld [vmem:[%s3861_s9] ss:$0 sm:$0xff] }
 0x12d   : > { %1355 = vmatmul.f32.gmra.mxu3 %v1054_v40 }
 0x12e   : > { %1490 = vmatmul.f32.gmra.mxu0 %v1414_v46  ;;  %v889_v51 = vpop.f32.mrf.mxu2  ;;  %v1141_v46 = vadd.f32 %v3415_v27, %v3155_v1 }
 0x12f   : > { %v3393_v57 = vadd.f32 %v889_v51, %v831_v47 }
 0x130   : > { %v833_v58 = vpop.f32.mrf.mxu1  ;;  %v3395_v61 = vpop.f32.mrf.mxu3 }
 0x131   : > { %v834_v4 = vadd.f32 %v833_v58, %v3118_v44  ;;  %v973_v44 = vmul.f32 0.01, %v3207_v53 }
 0x133   : > { %v3398_v2 = vpop.f32.mrf.mxu0  ;;  %1643 = vmatmul.f32.vlgmr.msrb.gmra.mxu2 %v985_v63  ;;  %v987_v40 = vsel %vm959_vm2, %v3207_v53, %v973_v44  ;;  %v1144_v44 = vadd.f32 %v3415_v27, %v3174_v18  ;;  %v1849_v18 = vld [vmem:[%s3866_s14 + $0x70] sm:$0xff] }
 0x136   : > { %v892_v55 = vpop.f32.mrf.mxu2 }
 0x137   : > { %v3402_v6 = vadd.f32 %v892_v55, %v834_v4 }
 0x138   : > { %v836_v9 = vpop.f32.mrf.mxu1  ;;  %v3405_v13 = vpop.f32.mrf.mxu3 }
 0x139   : > { %v837_v14 = vadd.f32 %v836_v9, %v3148_v59  ;;  %v751_v59 = vadd.f32 %v3105_v36, %v3053_v12  ;;  %v1850_v12 = vld [vmem:[%s3866_s14 + $0x78] sm:$0xff] }
 0x13a   : > { %1855 = vmatpush.msrb.mxu0 %v1850_v12 }
 0x13b   : > { %v3408_v19 = vpop.f32.mrf.mxu0  ;;  %1646 = vmatmul.f32.gmra.mxu2 %v986_v17  ;;  %v810_v48 = vadd.f32 %v3227_v3, %v751_v59 }
 0x13c   : > { %1856 = vmatpush.msrb.mxu0 %v1849_v18 }
 0x13d   : > { %v869_v63 = vadd.f32 %v3243_v15, %v810_v48  ;;  %v754_v15 = vadd.f32 %v3105_v36, %v3064_v20 }
 0x13e   : > { %v895_v24 = vpop.f32.mrf.mxu2 }
 0x13f   : > { %v3417_v30 = vadd.f32 %v895_v24, %v837_v14  ;;  %v928_v14 = vadd.f32 %v3253_v23, %v869_v63  ;;  %v988_v24 = vsel %vm960_vm4, %v3231_v7, %v974_v5 }
 0x140   : > { %v3420_v16 = vpop.f32.mrf.mxu3  ;;  %v1199_v34 = vpop.f32.mrf.mxu1 }
 0x141   : > { %v1200_v58 = vadd.f32 %v1199_v34, %v1141_v46  ;;  %v975_v7 = vmul.f32 0.01, %v928_v14  ;;  %vm961_vm7 = vcmp.ge.f32.partialorder %v928_v14, 0.0 }
 0x143   : > { %v1452_v47 = vpop.f32.mrf.mxu0  ;;  %1649 = vmatmul.f32.gmra.mxu2 %v987_v40  ;;  %v813_v40 = vadd.f32 %v3251_v21, %v754_v15  ;;  %v989_v12 = vsel %vm961_vm7, %v928_v14, %v975_v7 }
 0x144   : > { %v1453_v51 = vadd.f32 %v3425_v41, %v1452_v47 }
 0x146   : > { %vm1494_vm3 = vcmp.ge.f32.partialorder %v1453_v51, 0.0  ;;  %v1508_v4 = vmul.f32 0.01, %v1453_v51  ;;  %v1258_v55 = vpop.f32.mrf.mxu2 }
 0x147   : > { %v1259_v53 = vadd.f32 %v1258_v55, %v1200_v58 }
 0x148   : > { %v1202_v1 = vpop.f32.mrf.mxu1  ;;  %v1317_v3 = vpop.f32.mrf.mxu3  ;;  %v1522_v9 = vsel %vm1494_vm3, %v1453_v51, %v1508_v4  ;;  %v872_v51 = vadd.f32 %v3264_v32, %v813_v40  ;;  %v757_v32 = vadd.f32 %v3105_v36, %v3078_v29 }
 0x149   : > { %v1318_v17 = vadd.f32 %v1317_v3, %v1259_v53  ;;  %1718 = vmatmul.f32.vlgmr.msrb.gmra.mxu3 %v1522_v9  ;;  %v1203_v47 = vadd.f32 %v1202_v1, %v1144_v44  ;;  %v1147_v53 = vadd.f32 %v3415_v27, %v3196_v39  ;;  %v1848_v39 = vld [vmem:[%s3866_s14 + $0x68] sm:$0xff] }
 0x14a   : > { %v931_v5 = vadd.f32 %v3274_v38, %v872_v51  ;;  %v816_v9 = vadd.f32 %v3272_v37, %v757_v32  ;;  %1857 = vmatpush.msrb.mxu0 %v1848_v39  ;;  %v1150_v51 = vadd.f32 %v3415_v27, %v3218_v60  ;;  %v1847_v60 = vld [vmem:[%s3866_s14 + $0x60] sm:$0xff] }
 0x14b   : > { %vm1359_vm5 = vcmp.ge.f32.partialorder %v1318_v17, 0.0  ;;  %v1373_v34 = vmul.f32 0.01, %v1318_v17  ;;  %v1455_v59 = vpop.f32.mrf.mxu0  ;;  %1652 = vmatmul.f32.gmra.mxu2 %v988_v24 }
 0x14c   : > { %v1456_v46 = vadd.f32 %v3425_v41, %v1455_v59  ;;  %v875_v44 = vadd.f32 %v3288_v50, %v816_v9  ;;  %v976_v38 = vmul.f32 0.01, %v931_v5  ;;  %vm962_vm10 = vcmp.ge.f32.partialorder %v931_v5, 0.0  ;;  %1858 = vmatpush.msrb.mxu0 %v1847_v60  ;;  %v1846_v9 = vld [vmem:[%s3866_s14 + $0x58] sm:$0xff] }
 0x14d   : > { %v1387_v48 = vsel %vm1359_vm5, %v1318_v17, %v1373_v34  ;;  %v760_v50 = vadd.f32 %v3105_v36, %v3115_v43 }
 0x14e   : > { %v1261_v20 = vpop.f32.mrf.mxu2  ;;  %1584 = vmatmul.f32.vlgmr.msrb.gmra.mxu1 %v1387_v48  ;;  %vm1495_vm6 = vcmp.ge.f32.partialorder %v1456_v46, 0.0  ;;  %v1509_v23 = vmul.f32 0.01, %v1456_v46  ;;  %v990_v48 = vsel %vm962_vm10, %v931_v5, %v976_v38  ;;  %1859 = vmatpush.msrb.mxu0 %v1846_v9  ;;  %v946_v9 = vadd.f32 %v3382_v33, %v3377_v26  ;;  %v1842_v26 = vld [vmem:[%s3866_s14 + $0x38] sm:$0xff] }
 0x14f   : > { %v1262_v58 = vadd.f32 %v1261_v20, %v1203_v47  ;;  %v934_v47 = vadd.f32 %v3298_v56, %v875_v44  ;;  %v819_v7 = vadd.f32 %v3296_v54, %v760_v50 }
 0x150   : > { %v1205_v63 = vpop.f32.mrf.mxu1  ;;  %v1320_v21 = vpop.f32.mrf.mxu3  ;;  %v1523_v4 = vsel %vm1495_vm6, %v1456_v46, %v1509_v23 }
 0x151   : > { %v1321_v55 = vadd.f32 %v1320_v21, %v1262_v58  ;;  %1721 = vmatmul.f32.gmra.mxu3 %v1523_v4  ;;  %v1206_v15 = vadd.f32 %v1205_v63, %v1147_v53  ;;  %v878_v21 = vadd.f32 %v3312_v49, %v819_v7  ;;  %v977_v43 = vmul.f32 0.01, %v934_v47 }
 0x152   : > { %vm963_vm13 = vcmp.ge.f32.partialorder %v934_v47, 0.0  ;;  %v1153_v53 = vadd.f32 %v3415_v27, %v3237_v10 }
 0x153   : > { %v1458_v1 = vpop.f32.mrf.mxu0  ;;  %1655 = vmatmul.f32.gmra.mxu2 %v989_v12  ;;  %vm1360_vm8 = vcmp.ge.f32.partialorder %v1321_v55, 0.0  ;;  %v1374_v3 = vmul.f32 0.01, %v1321_v55  ;;  %v937_v12 = vadd.f32 %v3320_v8, %v878_v21  ;;  %v991_v49 = vsel %vm963_vm13, %v934_v47, %v977_v43  ;;  %v1845_v47 = vld [vmem:[%s3866_s14 + $0x50] sm:$0xff] }
 0x154   : > { %v1459_v17 = vadd.f32 %v3425_v41, %v1458_v1  ;;  %1860 = vmatpush.msrb.mxu0 %v1845_v47  ;;  %v1159_v43 = vadd.f32 %v3415_v27, %v3282_v31 }
 0x155   : > { %v1388_v24 = vsel %vm1360_vm8, %v1321_v55, %v1374_v3  ;;  %v978_v8 = vmul.f32 0.01, %v937_v12  ;;  %vm964_vm0 = vcmp.ge.f32.partialorder %v937_v12, 0.0 }
 0x156   : > { %v1264_v34 = vpop.f32.mrf.mxu2  ;;  %1587 = vmatmul.f32.gmra.mxu1 %v1388_v24  ;;  %vm1496_vm9 = vcmp.ge.f32.partialorder %v1459_v17, 0.0  ;;  %v1510_v29 = vmul.f32 0.01, %v1459_v17 }
 0x157   : > { %v1265_v14 = vadd.f32 %v1264_v34, %v1206_v15 }
 0x158   : > { %v1208_v59 = vpop.f32.mrf.mxu1  ;;  %v1323_v37 = vpop.f32.mrf.mxu3  ;;  %v1524_v40 = vsel %vm1496_vm9, %v1459_v17, %v1510_v29  ;;  %vm967_vm9 = vcmp.ge.f32.partialorder %v946_v9, 0.0 }
 0x159   : > { %v1324_v46 = vadd.f32 %v1323_v37, %v1265_v14  ;;  %1724 = vmatmul.f32.gmra.mxu3 %v1524_v40  ;;  %v1209_v58 = vadd.f32 %v1208_v59, %v1150_v51  ;;  %v940_v59 = vadd.f32 %v3344_v42, %v3342_v35  ;;  %v992_v37 = vsel %vm964_vm0, %v937_v12, %v978_v8 }
 0x15a   : > { %v1156_v40 = vadd.f32 %v3415_v27, %v3261_v28  ;;  %v1844_v28 = vld [vmem:[%s3866_s14 + $0x48] sm:$0xff] }
 0x15b   : > { %v1461_v20 = vpop.f32.mrf.mxu0  ;;  %1658 = vmatmul.f32.gmra.mxu2 %v990_v48  ;;  %vm1361_vm11 = vcmp.ge.f32.partialorder %v1324_v46, 0.0  ;;  %v1375_v23 = vmul.f32 0.01, %v1324_v46  ;;  %v979_v35 = vmul.f32 0.01, %v940_v59  ;;  %vm965_vm3 = vcmp.ge.f32.partialorder %v940_v59, 0.0  ;;  %1861 = vmatpush.msrb.mxu0 %v1844_v28 }
 0x15c   : > { %v1462_v18 = vadd.f32 %v3425_v41, %v1461_v20 }
 0x15d   : > { %v1389_v63 = vsel %vm1361_vm11, %v1324_v46, %v1375_v23 }
 0x15e   : > { %v1267_v4 = vpop.f32.mrf.mxu2  ;;  %1590 = vmatmul.f32.gmra.mxu1 %v1389_v63  ;;  %vm1497_vm12 = vcmp.ge.f32.partialorder %v1462_v18, 0.0  ;;  %v1511_v36 = vmul.f32 0.01, %v1462_v18 }
 0x15f   : > { %v1268_v56 = vadd.f32 %v1267_v4, %v1209_v58  ;;  %v943_v4 = vadd.f32 %v3362_v25, %v3360_v0  ;;  %v1843_v0 = vld [vmem:[%s3866_s14 + $0x40] sm:$0xff] }
 0x160   : > { %v1211_v55 = vpop.f32.mrf.mxu1  ;;  %v1326_v54 = vpop.f32.mrf.mxu3  ;;  %v1525_v32 = vsel %vm1497_vm12, %v1462_v18, %v1511_v36  ;;  %v993_v36 = vsel %vm965_vm3, %v940_v59, %v979_v35  ;;  %1862 = vmatpush.msrb.mxu0 %v1843_v0  ;;  %v955_v0 = vadd.f32 %v3420_v16, %v3417_v30 }
 0x161   : > { %v1327_v5 = vadd.f32 %v1326_v54, %v1268_v56  ;;  %1727 = vmatmul.f32.gmra.mxu3 %v1525_v32  ;;  %v1212_v15 = vadd.f32 %v1211_v55, %v1153_v53  ;;  %vm966_vm6 = vcmp.ge.f32.partialorder %v943_v4, 0.0 }
 0x162   : > { %1863 = vmatpush.msrb.mxu0 %v1842_v26  ;;  %v984_v30 = vmul.f32 0.01, %v955_v0  ;;  %v1174_v26 = vadd.f32 %v3415_v27, %v3387_v45 }
 0x163   : > { %v1464_v1 = vpop.f32.mrf.mxu0  ;;  %1661 = vmatmul.f32.gmra.mxu2 %v991_v49  ;;  %vm1362_vm14 = vcmp.ge.f32.partialorder %v1327_v5, 0.0  ;;  %v1376_v3 = vmul.f32 0.01, %v1327_v5  ;;  %v980_v49 = vmul.f32 0.01, %v943_v4 }
 0x164   : > { %v1465_v17 = vadd.f32 %v3425_v41, %v1464_v1 }
 0x165   : > { %v1390_v24 = vsel %vm1362_vm14, %v1327_v5, %v1376_v3 }
 0x166   : > { %v1512_v44 = vmul.f32 0.01, %v1465_v17  ;;  %v1270_v34 = vpop.f32.mrf.mxu2  ;;  %1593 = vmatmul.f32.gmra.mxu1 %v1390_v24  ;;  %vm1498_vm15 = vcmp.ge.f32.partialorder %v1465_v17, 0.0 }
 0x167   : > { %v1271_v29 = vadd.f32 %v1270_v34, %v1212_v15  ;;  %v1162_v15 = vadd.f32 %v3415_v27, %v3303_v62 }
 0x168   : > { %v1214_v10 = vpop.f32.mrf.mxu1  ;;  %v1329_v38 = vpop.f32.mrf.mxu3  ;;  %v1526_v39 = vsel %vm1498_vm15, %v1465_v17, %v1512_v44  ;;  %v994_v17 = vsel %vm966_vm6, %v943_v4, %v980_v49  ;;  %v1168_v4 = vadd.f32 %v3415_v27, %v3354_v52 }
 0x169   : > { %v1330_v14 = vadd.f32 %v1329_v38, %v1271_v29  ;;  %1730 = vmatmul.f32.gmra.mxu3 %v1526_v39  ;;  %v1215_v51 = vadd.f32 %v1214_v10, %v1156_v40  ;;  %v981_v39 = vmul.f32 0.01, %v946_v9  ;;  %v949_v40 = vadd.f32 %v3395_v61, %v3393_v57  ;;  %v1841_v57 = vld [vmem:[%s3866_s14 + $0x30] sm:$0xff] }
 0x16a   : > { %1864 = vmatpush.msrb.mxu0 %v1841_v57 }
 0x16b   : > { %v1377_v46 = vmul.f32 0.01, %v1330_v14  ;;  %v1467_v50 = vpop.f32.mrf.mxu0  ;;  %1664 = vmatmul.f32.gmra.mxu2 %v992_v37  ;;  %vm1363_vm1 = vcmp.ge.f32.partialorder %v1330_v14, 0.0  ;;  %vm968_vm12 = vcmp.ge.f32.partialorder %v949_v40, 0.0 }
 0x16c   : > { %v1468_v48 = vadd.f32 %v3425_v41, %v1467_v50  ;;  %v1165_v50 = vadd.f32 %v3415_v27, %v3333_v22 }
 0x16d   : > { %v1391_v20 = vsel %vm1363_vm1, %v1330_v14, %v1377_v46  ;;  %v995_v46 = vsel %vm967_vm9, %v946_v9, %v981_v39  ;;  %v1839_v9 = vld [vmem:[%s3866_s14 + $0x20] sm:$0xff] }
 0x16e   : > { %v1513_v23 = vmul.f32 0.01, %v1468_v48  ;;  %v1273_v7 = vpop.f32.mrf.mxu2  ;;  %1596 = vmatmul.f32.gmra.mxu1 %v1391_v20  ;;  %vm1499_vm2 = vcmp.ge.f32.partialorder %v1468_v48, 0.0 }
 0x16f   : > { %v1274_v42 = vadd.f32 %v1273_v7, %v1215_v51 }
 0x170   : > { %v1217_v18 = vpop.f32.mrf.mxu1  ;;  %v1332_v58 = vpop.f32.mrf.mxu3  ;;  %v1527_v63 = vsel %vm1499_vm2, %v1468_v48, %v1513_v23  ;;  %vm970_vm2 = vcmp.ge.f32.partialorder %v955_v0, 0.0 }
 0x171   : > { %v1333_v21 = vadd.f32 %v1332_v58, %v1274_v42  ;;  %1733 = vmatmul.f32.gmra.mxu3 %v1527_v63  ;;  %v1218_v54 = vadd.f32 %v1217_v18, %v1159_v43  ;;  %v982_v42 = vmul.f32 0.01, %v949_v40  ;;  %v952_v63 = vadd.f32 %v3405_v13, %v3402_v6  ;;  %v1840_v6 = vld [vmem:[%s3866_s14 + $0x28] sm:$0xff] }
 0x172   : > { %1865 = vmatpush.msrb.mxu0 %v1840_v6  ;;  %v998_v39 = vsel %vm970_vm2, %v955_v0, %v984_v30  ;;  %v2056_v0 = vld [vmem:[%s3557_s22] sm:$0xff] }
 0x173   : > { %v1378_v60 = vmul.f32 0.01, %v1333_v21  ;;  %v1470_v56 = vpop.f32.mrf.mxu0  ;;  %1667 = vmatmul.f32.gmra.mxu2 %v993_v36  ;;  %vm1364_vm4 = vcmp.ge.f32.partialorder %v1333_v21, 0.0  ;;  %vm969_vm15 = vcmp.ge.f32.partialorder %v952_v63, 0.0 }
 0x174   : > { %v1471_v55 = vadd.f32 %v3425_v41, %v1470_v56  ;;  %1866 = vmatpush.msrb.mxu0 %v1839_v9 }
 0x175   : > { %v1392_v32 = vsel %vm1364_vm4, %v1333_v21, %v1378_v60  ;;  %v996_v21 = vsel %vm968_vm12, %v949_v40, %v982_v42 }
 0x176   : > { %v1514_v5 = vmul.f32 0.01, %v1471_v55  ;;  %v1276_v12 = vpop.f32.mrf.mxu2  ;;  %1599 = vmatmul.f32.gmra.mxu1 %v1392_v32  ;;  %vm1500_vm5 = vcmp.ge.f32.partialorder %v1471_v55, 0.0 }
 0x177   : > { %v1277_v53 = vadd.f32 %v1276_v12, %v1218_v54 }
 0x178   : > { %v1220_v31 = vpop.f32.mrf.mxu1  ;;  %v1335_v25 = vpop.f32.mrf.mxu3  ;;  %v1528_v1 = vsel %vm1500_vm5, %v1471_v55, %v1514_v5  ;;  %v983_v5 = vmul.f32 0.01, %v952_v63 }
 0x179   : > { %v1336_v3 = vadd.f32 %v1335_v25, %v1277_v53  ;;  %1736 = vmatmul.f32.gmra.mxu3 %v1528_v1  ;;  %v1221_v8 = vadd.f32 %v1220_v31, %v1162_v15  ;;  %v1171_v25 = vadd.f32 %v3415_v27, %v3370_v11  ;;  %v1838_v11 = vld [vmem:[%s3866_s14 + $0x18] sm:$0xff] }
 0x17a   : > { %v997_v31 = vsel %vm969_vm15, %v952_v63, %v983_v5  ;;  %1867 = vmatpush.msrb.mxu0 %v1838_v11 }
 0x17b   : > { %v1379_v24 = vmul.f32 0.01, %v1336_v3  ;;  %v1473_v44 = vpop.f32.mrf.mxu0  ;;  %1670 = vmatmul.f32.gmra.mxu2 %v994_v17  ;;  %vm1365_vm7 = vcmp.ge.f32.partialorder %v1336_v3, 0.0 }
 0x17c   : > { %v1474_v34 = vadd.f32 %v3425_v41, %v1473_v44 }
 0x17d   : > { %v1393_v29 = vsel %vm1365_vm7, %v1336_v3, %v1379_v24 }
 0x17e   : > { %v1515_v10 = vmul.f32 0.01, %v1474_v34  ;;  %v1279_v38 = vpop.f32.mrf.mxu2  ;;  %1602 = vmatmul.f32.gmra.mxu1 %v1393_v29  ;;  %vm1501_vm8 = vcmp.ge.f32.partialorder %v1474_v34, 0.0 }
 0x17f   : > { %v1280_v33 = vadd.f32 %v1279_v38, %v1221_v8 }
 0x180   : > { %v1223_v62 = vpop.f32.mrf.mxu1  ;;  %v1338_v14 = vpop.f32.mrf.mxu3  ;;  %v1529_v59 = vsel %vm1501_vm8, %v1474_v34, %v1515_v10 }
 0x181   : > { %v1339_v37 = vadd.f32 %v1338_v14, %v1280_v33  ;;  %1739 = vmatmul.f32.gmra.mxu3 %v1529_v59  ;;  %v1224_v20 = vadd.f32 %v1223_v62, %v1165_v50  ;;  %v1837_v50 = vld [vmem:[%s3866_s14 + $0x10] sm:$0xff] }
 0x182   : > { %1868 = vmatpush.msrb.mxu0 %v1837_v50  ;;  %v2060_v50 = vld [vmem:[%s3557_s22 + $0x20] sm:$0xff] }
 0x183   : > { %v1380_v47 = vmul.f32 0.01, %v1339_v37  ;;  %v1476_v48 = vpop.f32.mrf.mxu0  ;;  %1673 = vmatmul.f32.gmra.mxu2 %v995_v46  ;;  %vm1366_vm10 = vcmp.ge.f32.partialorder %v1339_v37, 0.0 }
 0x184   : > { %v1477_v51 = vadd.f32 %v3425_v41, %v1476_v48 }
 0x185   : > { %v1394_v23 = vsel %vm1366_vm10, %v1339_v37, %v1380_v47 }
 0x186   : > { %v1516_v7 = vmul.f32 0.01, %v1477_v51  ;;  %v1282_v35 = vpop.f32.mrf.mxu2  ;;  %1605 = vmatmul.f32.gmra.mxu1 %v1394_v23  ;;  %vm1502_vm11 = vcmp.ge.f32.partialorder %v1477_v51, 0.0  ;;  %v1177_v23 = vadd.f32 %v3415_v27, %v3398_v2 }
 0x187   : > { %v1283_v61 = vadd.f32 %v1282_v35, %v1224_v20 }
 0x188   : > { %v1226_v22 = vpop.f32.mrf.mxu1  ;;  %v1341_v28 = vpop.f32.mrf.mxu3  ;;  %v1530_v18 = vsel %vm1502_vm11, %v1477_v51, %v1516_v7 }
 0x189   : > { %v1342_v58 = vadd.f32 %v1341_v28, %v1283_v61  ;;  %1742 = vmatmul.f32.gmra.mxu3 %v1530_v18  ;;  %v1227_v56 = vadd.f32 %v1226_v22, %v1168_v4  ;;  %v1836_v18 = vld [vmem:[%s3866_s14 + $0x8] sm:$0xff] }
 0x18a   : > { %1869 = vmatpush.msrb.mxu0 %v1836_v18 }
 0x18b   : > { %v1381_v36 = vmul.f32 0.01, %v1342_v58  ;;  %v1479_v43 = vpop.f32.mrf.mxu0  ;;  %1676 = vmatmul.f32.gmra.mxu2 %v996_v21  ;;  %vm1367_vm13 = vcmp.ge.f32.partialorder %v1342_v58, 0.0 }
 0x18c   : > { %v1480_v60 = vadd.f32 %v3425_v41, %v1479_v43 }
 0x18d   : > { %v1395_v55 = vsel %vm1367_vm13, %v1342_v58, %v1381_v36  ;;  %v1180_v36 = vadd.f32 %v3415_v27, %v3408_v19  ;;  %v1835_v19 = vld [vmem:[%s3866_s14] sm:$0xff] }
 0x18e   : > { %v1517_v54 = vmul.f32 0.01, %v1480_v60  ;;  %v1285_v32 = vpop.f32.mrf.mxu2  ;;  %1608 = vmatmul.f32.gmra.mxu1 %v1395_v55  ;;  %vm1503_vm14 = vcmp.ge.f32.partialorder %v1480_v60, 0.0  ;;  %1870 = vmatpush.msrb.mxu0 %v1835_v19 }
 0x18f   : > { %v1286_v13 = vadd.f32 %v1285_v32, %v1227_v56 }
 0x190   : > { %v1229_v52 = vpop.f32.mrf.mxu1  ;;  %v1344_v12 = vpop.f32.mrf.mxu3  ;;  %v1531_v49 = vsel %vm1503_vm14, %v1480_v60, %v1517_v54 }
 0x191   : > { %v1345_v53 = vadd.f32 %v1344_v12, %v1286_v13  ;;  %1745 = vmatmul.f32.gmra.mxu3 %v1531_v49  ;;  %v1230_v15 = vadd.f32 %v1229_v52, %v1171_v25 }
 0x193   : > { %v1382_v1 = vmul.f32 0.01, %v1345_v53  ;;  %v1482_v3 = vpop.f32.mrf.mxu0  ;;  %1679 = vmatmul.f32.gmra.mxu2 %v997_v31  ;;  %vm1368_vm0 = vcmp.ge.f32.partialorder %v1345_v53, 0.0  ;;  %v2448_v31 = vmov 0  }
 0x194   : > { %v1483_v17 = vadd.f32 %v3425_v41, %v1482_v3  ;;  %2376 = vset.pattern.permute.xlu1 %v2448_v31  ;;  %2378 = vset.pattern.permute.xlu0 %v2448_v31 }
 0x195   : > { %v1396_v24 = vsel %vm1368_vm0, %v1345_v53, %v1382_v1  ;;  %2071 = vperm.xlu1 %2376, %v2056_v0   ;;  %2377 = vset.pattern.permute.xlu2 %v2448_v31  ;;  %v2061_v0 = vld [vmem:[%s3557_s22 + $0x28] sm:$0xff] }
 0x196   : > { %v1518_v44 = vmul.f32 0.01, %v1483_v17  ;;  %v1288_v34 = vpop.f32.mrf.mxu2  ;;  %1611 = vmatmul.f32.gmra.mxu1 %v1396_v24  ;;  %vm1504_vm1 = vcmp.ge.f32.partialorder %v1483_v17, 0.0 }
 0x197   : > { %v1289_v16 = vadd.f32 %v1288_v34, %v1230_v15  ;;  %v2058_v34 = vld [vmem:[%s3557_s22 + $0x10] sm:$0xff] }
 0x198   : > { %v1232_v8 = vpop.f32.mrf.mxu1  ;;  %v1347_v29 = vpop.f32.mrf.mxu3  ;;  %v1532_v10 = vsel %vm1504_vm1, %v1483_v17, %v1518_v44  ;;  %v3563_v17 = vld [vmem:[%s3865_s13] ss:$0 sm:$0xff]  ;;  %2077 = vperm.xlu0 %2378, %v2058_v34  }
 0x199   : > { %v1348_v38 = vadd.f32 %v1347_v29, %v1289_v16  ;;  %1748 = vmatmul.f32.gmra.mxu3 %v1532_v10  ;;  %v1233_v59 = vadd.f32 %v1232_v8, %v1174_v26  ;;  %v2068_v34 = vld [vmem:[%s3557_s22 + $0x60] sm:$0xff] }
 0x19b   : > { %v1383_v33 = vmul.f32 0.01, %v1348_v38  ;;  %v1485_v62 = vpop.f32.mrf.mxu0  ;;  %1682 = vmatmul.f32.gmra.mxu2 %v998_v39  ;;  %vm1369_vm3 = vcmp.ge.f32.partialorder %v1348_v38, 0.0 }
 0x19c   : > { %v1486_v14 = vadd.f32 %v3425_v41, %v1485_v62 }
 0x19d   : > { %v1397_v37 = vsel %vm1369_vm3, %v1348_v38, %v1383_v33  ;;  %2083 = vperm.xlu1 %2376, %v2060_v50  }
 0x19e   : > { %v1519_v40 = vmul.f32 0.01, %v1486_v14  ;;  %v1291_v46 = vpop.f32.mrf.mxu2  ;;  %1614 = vmatmul.f32.gmra.mxu1 %v1397_v37  ;;  %vm1505_vm4 = vcmp.ge.f32.partialorder %v1486_v14, 0.0 }
 0x19f   : > { %v1292_v47 = vadd.f32 %v1291_v46, %v1233_v59  ;;  %v2057_v46 = vld [vmem:[%s3557_s22 + $0x8] sm:$0xff] }
 0x1a0   : > { %v1235_v48 = vpop.f32.mrf.mxu1  ;;  %v1350_v45 = vpop.f32.mrf.mxu3  ;;  %v1533_v51 = vsel %vm1505_vm4, %v1486_v14, %v1519_v40  ;;  %2074 = vperm.xlu2 %2377, %v2057_v46   ;;  %v2066_v46 = vld [vmem:[%s3557_s22 + $0x50] sm:$0xff] }
 0x1a1   : > { %v1351_v20 = vadd.f32 %v1350_v45, %v1292_v47  ;;  %1751 = vmatmul.f32.gmra.mxu3 %v1533_v51  ;;  %v1236_v57 = vadd.f32 %v1235_v48, %v1177_v23 }
 0x1a3   : > { %v1384_v7 = vmul.f32 0.01, %v1351_v20  ;;  %v1488_v35 = vpop.f32.mrf.mxu0  ;;  %vm1370_vm5 = vcmp.ge.f32.partialorder %v1351_v20, 0.0 }
 0x1a4   : > { %v1489_v42 = vadd.f32 %v3425_v41, %v1488_v35 }
 0x1a5   : > { %v1398_v61 = vsel %vm1370_vm5, %v1351_v20, %v1384_v7 }
 0x1a6   : > { %v1520_v22 = vmul.f32 0.01, %v1489_v42  ;;  %v1294_v28 = vpop.f32.mrf.mxu2  ;;  %1617 = vmatmul.f32.gmra.mxu1 %v1398_v61  ;;  %vm1506_vm6 = vcmp.ge.f32.partialorder %v1489_v42, 0.0 }
 0x1a7   : > { %v1295_v58 = vadd.f32 %v1294_v28, %v1236_v57 }
 0x1a8   : > { %v1353_v63 = vpop.f32.mrf.mxu3  ;;  %v1534_v21 = vsel %vm1506_vm6, %v1489_v42, %v1520_v22  ;;  %v1238_v4 = vpop.f32.mrf.mxu1 }
 0x1a9   : > { %v1354_v2 = vadd.f32 %v1353_v63, %v1295_v58  ;;  %1754 = vmatmul.f32.gmra.mxu3 %v1534_v21  ;;  %v1239_v55 = vadd.f32 %v1238_v4, %v1180_v36  ;;  %v2062_v21 = vld [vmem:[%s3557_s22 + $0x30] sm:$0xff] }
 0x1aa   : > { %2089 = vperm.xlu1 %2376, %v2062_v21  }
 0x1ab   : > { %v1385_v43 = vmul.f32 0.01, %v1354_v2  ;;  %v1491_v60 = vpop.f32.mrf.mxu0  ;;  %vm1371_vm7 = vcmp.ge.f32.partialorder %v1354_v2, 0.0 }
 0x1ac   : > { %v1492_v56 = vadd.f32 %v3425_v41, %v1491_v60 }
 0x1ad   : > { %v1399_v54 = vsel %vm1371_vm7, %v1354_v2, %v1385_v43  ;;  %v2059_v2 = vld [vmem:[%s3557_s22 + $0x18] sm:$0xff] }
 0x1ae   : > { %v1521_v32 = vmul.f32 0.01, %v1492_v56  ;;  %v1297_v5 = vpop.f32.mrf.mxu2  ;;  %1620 = vmatmul.f32.gmra.mxu1 %v1399_v54  ;;  %vm1507_vm8 = vcmp.ge.f32.partialorder %v1492_v56, 0.0  ;;  %2080 = vperm.xlu2 %2377, %v2059_v2  }
 0x1af   : > { %v1298_v6 = vadd.f32 %v1297_v5, %v1239_v55  ;;  %v2064_v5 = vld [vmem:[%s3557_s22 + $0x40] sm:$0xff] }
 0x1b0   : > { %v1356_v13 = vpop.f32.mrf.mxu3  ;;  %v1535_v52 = vsel %vm1507_vm8, %v1492_v56, %v1521_v32 }
 0x1b1   : > { %v1357_v12 = vadd.f32 %v1356_v13, %v1298_v6  ;;  %1757 = vmatmul.f32.gmra.mxu3 %v1535_v52 }
 0x1b2   : > { %2095 = vperm.xlu1 %2376, %v2064_v5  }
 0x1b3   : > { %v1386_v27 = vmul.f32 0.01, %v1357_v12  ;;  %vm1372_vm9 = vcmp.ge.f32.partialorder %v1357_v12, 0.0 }
 0x1b5   : > { %v1400_v41 = vsel %vm1372_vm9, %v1357_v12, %v1386_v27 }
 0x1b6   : > { %1623 = vmatmul.f32.gmra.mxu1 %v1400_v41  ;;  %v1644_v49 = vpop.f32.mrf.mxu2  ;;  %2086 = vperm.xlu2 %2377, %v2061_v0  }
 0x1be   : > { %v1647_v53 = vpop.f32.mrf.mxu2 }
 0x1c6   : > { %v1650_v25 = vpop.f32.mrf.mxu2 }
 0x1cb   : > { %v1585_v1 = vpop.f32.mrf.mxu1 }
 0x1cc   : > { %v1645_v3 = vadd.f32 %v1644_v49, %v1585_v1  ;;  %v1719_v9 = vpop.f32.mrf.mxu3  ;;  %v2065_v49 = vld [vmem:[%s3557_s22 + $0x48] sm:$0xff] }
 0x1cd   : > { %2098 = vperm.xlu0 %2378, %v2065_v49  }
 0x1ce   : > { %v1761_v15 = vadd.f32 %v1719_v9, %v1645_v3  ;;  %v1653_v24 = vpop.f32.mrf.mxu2 }
 0x1d0   : > { %v1779_v44 = vadd.f32 %v3563_v17, %v1761_v15 }
 0x1d2   : > { %vm1793_vm10 = vcmp.ge.f32.partialorder %v1779_v44, 0.0  ;;  %v1807_v30 = vmul.f32 0.01, %v1779_v44 }
 0x1d3   : > { %v1588_v11 = vpop.f32.mrf.mxu1 }
 0x1d4   : > { %v1648_v16 = vadd.f32 %v1647_v53, %v1588_v11  ;;  %v1722_v8 = vpop.f32.mrf.mxu3  ;;  %v1821_v29 = vsel %vm1793_vm10, %v1779_v44, %v1807_v30  ;;  %v2067_v53 = vld [vmem:[%s3557_s22 + $0x58] sm:$0xff] }
 0x1d5   : > { %1871 = vmatmul.f32.vlgmr.msrb.gmra.mxu0 %v1821_v29  ;;  %2104 = vperm.xlu1 %2376, %v2067_v53   ;;  %v1914_v53 = vlaneseq }
 0x1d6   : > { %v1762_v10 = vadd.f32 %v1722_v8, %v1648_v16  ;;  %v1656_v39 = vpop.f32.mrf.mxu2  ;;  %2107 = vperm.xlu0 %2378, %v2068_v34  }
 0x1d7   : > { %v3592_v0 = vand.u32 127, %v1914_v53 }
 0x1d8   : > { %v1780_v38 = vadd.f32 %v3563_v17, %v1762_v10 }
 0x1da   : > { %vm1794_vm11 = vcmp.ge.f32.partialorder %v1780_v38, 0.0  ;;  %v1808_v26 = vmul.f32 0.01, %v1780_v38 }
 0x1db   : > { %v1591_v33 = vpop.f32.mrf.mxu1 }
 0x1dc   : > { %v1651_v62 = vadd.f32 %v1650_v25, %v1591_v33  ;;  %v1725_v14 = vpop.f32.mrf.mxu3  ;;  %v1822_v59 = vsel %vm1794_vm11, %v1780_v38, %v1808_v26  ;;  %v2063_v38 = vld [vmem:[%s3557_s22 + $0x38] sm:$0xff] }
 0x1dd   : > { %1874 = vmatmul.f32.gmra.mxu0 %v1822_v59  ;;  %2092 = vperm.xlu2 %2377, %v2063_v38  }
 0x1de   : > { %v1763_v37 = vadd.f32 %v1725_v14, %v1651_v62  ;;  %v1659_v48 = vpop.f32.mrf.mxu2 }
 0x1e0   : > { %v1781_v40 = vadd.f32 %v3563_v17, %v1763_v37 }
 0x1e2   : > { %vm1795_vm12 = vcmp.ge.f32.partialorder %v1781_v40, 0.0  ;;  %v1809_v47 = vmul.f32 0.01, %v1781_v40 }
 0x1e3   : > { %v1594_v45 = vpop.f32.mrf.mxu1 }
 0x1e4   : > { %v1654_v51 = vadd.f32 %v1653_v24, %v1594_v45  ;;  %v1728_v20 = vpop.f32.mrf.mxu3  ;;  %v1823_v23 = vsel %vm1795_vm12, %v1781_v40, %v1809_v47 }
 0x1e5   : > { %1877 = vmatmul.f32.gmra.mxu0 %v1823_v23  ;;  %2101 = vperm.xlu2 %2377, %v2066_v46  }
 0x1e6   : > { %v1764_v7 = vadd.f32 %v1728_v20, %v1654_v51  ;;  %v1662_v18 = vpop.f32.mrf.mxu2  ;;  %v2069_v51 = vld [vmem:[%s3557_s22 + $0x68] sm:$0xff] }
 0x1e8   : > { %v1782_v35 = vadd.f32 %v3563_v17, %v1764_v7 }
 0x1ea   : > { %vm1796_vm13 = vcmp.ge.f32.partialorder %v1782_v35, 0.0  ;;  %v1810_v42 = vmul.f32 0.01, %v1782_v35 }
 0x1eb   : > { %v1597_v57 = vpop.f32.mrf.mxu1 }
 0x1ec   : > { %v1657_v61 = vadd.f32 %v1656_v39, %v1597_v57  ;;  %v1731_v22 = vpop.f32.mrf.mxu3  ;;  %v1824_v28 = vsel %vm1796_vm13, %v1782_v35, %v1810_v42 }
 0x1ed   : > { %1880 = vmatmul.f32.gmra.mxu0 %v1824_v28  ;;  %2110 = vperm.xlu2 %2377, %v2069_v51  }
 0x1ee   : > { %v1765_v58 = vadd.f32 %v1731_v22, %v1657_v61  ;;  %v1665_v54 = vpop.f32.mrf.mxu2 }
 0x1f0   : > { %v1783_v63 = vadd.f32 %v3563_v17, %v1765_v58 }
 0x1f2   : > { %vm1797_vm14 = vcmp.ge.f32.partialorder %v1783_v63, 0.0  ;;  %v1811_v4 = vmul.f32 0.01, %v1783_v63 }
 0x1f3   : > { %v1600_v36 = vpop.f32.mrf.mxu1 }
 0x1f4   : > { %v1660_v43 = vadd.f32 %v1659_v48, %v1600_v36  ;;  %v1734_v60 = vpop.f32.mrf.mxu3  ;;  %v1825_v56 = vsel %vm1797_vm14, %v1783_v63, %v1811_v4 }
 0x1f5   : > { %1883 = vmatmul.f32.gmra.mxu0 %v1825_v56 }
 0x1f6   : > { %v1766_v55 = vadd.f32 %v1734_v60, %v1660_v43  ;;  %v1668_v31 = vpop.f32.mrf.mxu2 }
 0x1f8   : > { %v1784_v32 = vadd.f32 %v3563_v17, %v1766_v55 }
 0x1fa   : > { %vm1798_vm15 = vcmp.ge.f32.partialorder %v1784_v32, 0.0  ;;  %v1812_v6 = vmul.f32 0.01, %v1784_v32 }
 0x1fb   : > { %v1603_v13 = vpop.f32.mrf.mxu1 }
 0x1fc   : > { %v1663_v52 = vadd.f32 %v1662_v18, %v1603_v13  ;;  %v1737_v12 = vpop.f32.mrf.mxu3  ;;  %v1826_v19 = vsel %vm1798_vm15, %v1784_v32, %v1812_v6 }
 0x1fd   : > { %1886 = vmatmul.f32.gmra.mxu0 %v1826_v19 }
 0x1fe   : > { %v1767_v27 = vadd.f32 %v1737_v12, %v1663_v52  ;;  %v1671_v11 = vpop.f32.mrf.mxu2 }
 0x200   : > { %v1785_v41 = vadd.f32 %v3563_v17, %v1767_v27 }
 0x202   : > { %vm1799_vm0 = vcmp.ge.f32.partialorder %v1785_v41, 0.0  ;;  %v1813_v25 = vmul.f32 0.01, %v1785_v41 }
 0x203   : > { %v1606_v1 = vpop.f32.mrf.mxu1 }
 0x204   : > { %v1666_v3 = vadd.f32 %v1665_v54, %v1606_v1  ;;  %v1740_v9 = vpop.f32.mrf.mxu3  ;;  %v1827_v15 = vsel %vm1799_vm0, %v1785_v41, %v1813_v25 }
 0x205   : > { %1889 = vmatmul.f32.gmra.mxu0 %v1827_v15 }
 0x206   : > { %v1768_v24 = vadd.f32 %v1740_v9, %v1666_v3  ;;  %v1674_v40 = vpop.f32.mrf.mxu2 }
 0x207   : > { %v2072_v25 = vpop.permute.xlu1 %2071 }
 0x208   : > { %v1786_v44 = vadd.f32 %v3563_v17, %v1768_v24  ;;  %vm2112_vm8 = vcmp.eq.s32.totalorder %v3592_v0, %v2072_v25  ;;  %v2075_v24 = vpop.permute.xlu2 %2074 }
 0x209   : > { %vm2113_vm9 = vcmp.eq.s32.totalorder %v3592_v0, %v2075_v24 }
 0x20a   : > { %vm1800_vm1 = vcmp.ge.f32.partialorder %v1786_v44, 0.0  ;;  %v1814_v30 = vmul.f32 0.01, %v1786_v44 }
 0x20b   : > { %v1609_v16 = vpop.f32.mrf.mxu1 }
 0x20c   : > { %v1669_v8 = vadd.f32 %v1668_v31, %v1609_v16  ;;  %v1743_v29 = vpop.f32.mrf.mxu3  ;;  %v1828_v10 = vsel %vm1800_vm1, %v1786_v44, %v1814_v30  ;;  %v3597_v31 = vld [vmem:[%s3867_s15] ss:$0 sm:$0xff]  ;;  %v2078_v44 = vpop.permute.xlu0 %2077 }
 0x20d   : > { %1892 = vmatmul.f32.gmra.mxu0 %v1828_v10  ;;  %vm2114_vm10 = vcmp.eq.s32.totalorder %v3592_v0, %v2078_v44 }
 0x20e   : > { %v1769_v39 = vadd.f32 %v1743_v29, %v1669_v8  ;;  %v1677_v42 = vpop.f32.mrf.mxu2 }
 0x210   : > { %v1787_v26 = vadd.f32 %v3563_v17, %v1769_v39 }
 0x212   : > { %vm1801_vm2 = vcmp.ge.f32.partialorder %v1787_v26, 0.0  ;;  %v1815_v33 = vmul.f32 0.01, %v1787_v26 }
 0x213   : > { %v1612_v62 = vpop.f32.mrf.mxu1 }
 0x214   : > { %v1672_v14 = vadd.f32 %v1671_v11, %v1612_v62  ;;  %v1746_v59 = vpop.f32.mrf.mxu3  ;;  %v1829_v37 = vsel %vm1801_vm2, %v1787_v26, %v1815_v33 }
 0x215   : > { %1895 = vmatmul.f32.gmra.mxu0 %v1829_v37 }
 0x216   : > { %v1770_v50 = vadd.f32 %v1746_v59, %v1672_v14  ;;  %v1680_v2 = vpop.f32.mrf.mxu2 }
 0x218   : > { %v1788_v47 = vadd.f32 %v3563_v17, %v1770_v50 }
 0x21a   : > { %vm1802_vm3 = vcmp.ge.f32.partialorder %v1788_v47, 0.0  ;;  %v1816_v48 = vmul.f32 0.01, %v1788_v47 }
 0x21b   : > { %v1615_v45 = vpop.f32.mrf.mxu1 }
 0x21c   : > { %v1675_v20 = vadd.f32 %v1674_v40, %v1615_v45  ;;  %v1749_v23 = vpop.f32.mrf.mxu3  ;;  %v1830_v7 = vsel %vm1802_vm3, %v1788_v47, %v1816_v48  ;;  %v2081_v45 = vpop.permute.xlu2 %2080 }
 0x21d   : > { %1898 = vmatmul.f32.gmra.mxu0 %v1830_v7  ;;  %vm2115_vm14 = vcmp.eq.s32.totalorder %v3592_v0, %v2081_v45 }
 0x21e   : > { %v1771_v35 = vadd.f32 %v1749_v23, %v1675_v20  ;;  %v1683_v5 = vpop.f32.mrf.mxu2  ;;  %v2084_v23 = vpop.permute.xlu1 %2083 }
 0x21f   : > { %vm2116_vm11 = vcmp.eq.s32.totalorder %v3592_v0, %v2084_v23 }
 0x220   : > { %v1789_v57 = vadd.f32 %v3563_v17, %v1771_v35 }
 0x222   : > { %vm1803_vm4 = vcmp.ge.f32.partialorder %v1789_v57, 0.0  ;;  %v1817_v61 = vmul.f32 0.01, %v1789_v57 }
 0x223   : > { %v1618_v22 = vpop.f32.mrf.mxu1 }
 0x224   : > { %v1678_v28 = vadd.f32 %v1677_v42, %v1618_v22  ;;  %v1752_v18 = vpop.f32.mrf.mxu3  ;;  %v1831_v58 = vsel %vm1803_vm4, %v1789_v57, %v1817_v61  ;;  %v2087_v7 = vpop.permute.xlu2 %2086 }
 0x225   : > { %1901 = vmatmul.f32.gmra.mxu0 %v1831_v58  ;;  %vm2117_vm12 = vcmp.eq.s32.totalorder %v3592_v0, %v2087_v7 }
 0x226   : > { %v1772_v63 = vadd.f32 %v1752_v18, %v1678_v28  ;;  %v2090_v57 = vpop.permute.xlu1 %2089 }
 0x227   : > { %vm2118_vm15 = vcmp.eq.s32.totalorder %v3592_v0, %v2090_v57 }
 0x228   : > { %v1790_v21 = vadd.f32 %v3563_v17, %v1772_v63 }
 0x22a   : > { %vm1804_vm5 = vcmp.ge.f32.partialorder %v1790_v21, 0.0  ;;  %v1818_v4 = vmul.f32 0.01, %v1790_v21 }
 0x22b   : > { %v1621_v36 = vpop.f32.mrf.mxu1 }
 0x22c   : > { %v1681_v43 = vadd.f32 %v1680_v2, %v1621_v36  ;;  %v1755_v60 = vpop.f32.mrf.mxu3  ;;  %v1832_v56 = vsel %vm1804_vm5, %v1790_v21, %v1818_v4 }
 0x22d   : > { %1904 = vmatmul.f32.gmra.mxu0 %v1832_v56 }
 0x22e   : > { %v1773_v55 = vadd.f32 %v1755_v60, %v1681_v43  ;;  %v3668_v2 = vpop.permute.xlu1 %2095 }
 0x22f   : > { %vm2120_vm3 = vcmp.eq.s32.totalorder %v3592_v0, %v3668_v2 }
 0x230   : > { %v1791_v54 = vadd.f32 %v3563_v17, %v1773_v55 }
 0x232   : > { %vm1805_vm6 = vcmp.ge.f32.partialorder %v1791_v54, 0.0  ;;  %v1819_v32 = vmul.f32 0.01, %v1791_v54 }
 0x233   : > { %v1624_v6 = vpop.f32.mrf.mxu1 }
 0x234   : > { %v1684_v13 = vadd.f32 %v1683_v5, %v1624_v6  ;;  %v1833_v52 = vsel %vm1805_vm6, %v1791_v54, %v1819_v32  ;;  %v1758_v12 = vpop.f32.mrf.mxu3  ;;  %vm2182_vm6 = vcmp.eq.s32.totalorder %v3592_v0, 7 }
 0x235   : > { %1907 = vmatmul.f32.gmra.mxu0 %v1833_v52 }
 0x236   : > { %v1774_v19 = vadd.f32 %v1758_v12, %v1684_v13 }
 0x237   : > { %v2093_v22 = vpop.permute.xlu2 %2092 }
 0x238   : > { %v1792_v27 = vadd.f32 %v3563_v17, %v1774_v19  ;;  %vm2119_vm13 = vcmp.eq.s32.totalorder %v3592_v0, %v2093_v22 }
 0x23a   : > { %vm1806_vm7 = vcmp.ge.f32.partialorder %v1792_v27, 0.0  ;;  %v1820_v41 = vmul.f32 0.01, %v1792_v27 }
 0x23c   : > { %v1834_v49 = vsel %vm1806_vm7, %v1792_v27, %v1820_v41 }
 0x23d   : > { %1910 = vmatmul.f32.gmra.mxu0 %v1834_v49 }
 0x23f   : > { %v3659_v28 = vpop.permute.xlu0 %2098  ;;  %v3683_v32 = vpop.permute.xlu2 %2101 }
 0x240   : > { %vm2121_vm0 = vcmp.eq.s32.totalorder %v3592_v0, %v3659_v28  ;;  %vm2122_vm1 = vcmp.eq.s32.totalorder %v3592_v0, %v3683_v32 }
 0x247   : > { %v3675_v43 = vpop.permute.xlu1 %2104  ;;  %v3691_v19 = vpop.permute.xlu2 %2110 }
 0x248   : > { %v3671_v4 = vpop.permute.xlu0 %2107  ;;  %vm2125_vm4 = vcmp.eq.s32.totalorder %v3592_v0, %v3691_v19  ;;  %vm2123_vm5 = vcmp.eq.s32.totalorder %v3592_v0, %v3675_v43 }
 0x249   : > { %vm2124_vm2 = vcmp.eq.s32.totalorder %v3592_v0, %v3671_v4 }
 0x252   : > { %v1872_v1 = vpop.f32.mrf.mxu0 }
 0x253   : > { %v3601_v3 = vadd.f32 %v3597_v31, %v1872_v1 }
 0x255   : > { %1916 = vmax.xlane.f32.xlu0 %v3601_v3  ;;  %v2126_v17 = vsel %vm2112_vm8, %v3601_v3, 0.0 }
 0x256   : > { %2140 = vadd.xlane.f32.xlu1 %v2126_v17 }
 0x25a   : > { %v1875_v9 = vpop.f32.mrf.mxu0 }
 0x25b   : > { %v3606_v15 = vadd.f32 %v3597_v31, %v1875_v9 }
 0x25d   : > { %1918 = vmax.xlane.f32.xlu0 %v3606_v15  ;;  %v2127_v11 = vsel %vm2113_vm9, %v3606_v15, 0.0 }
 0x262   : > { %v1878_v34 = vpop.f32.mrf.mxu0 }
 0x263   : > { %v3612_v30 = vadd.f32 %v3597_v31, %v1878_v34 }
 0x265   : > { %2142 = vadd.xlane.f32.xlu0 %v2127_v11  ;;  %1920 = vmax.xlane.f32.xlu1 %v3612_v30  ;;  %v2128_v16 = vsel %vm2114_vm10, %v3612_v30, 0.0 }
 0x266   : > { %2144 = vadd.xlane.f32.xlu2 %v2128_v16 }
 0x26a   : > { %v1881_v8 = vpop.f32.mrf.mxu0 }
 0x26b   : > { %v3618_v29 = vadd.f32 %v3597_v31, %v1881_v8 }
 0x26d   : > { %1922 = vmax.xlane.f32.xlu1 %v3618_v29  ;;  %v2129_v36 = vsel %vm2115_vm14, %v3618_v29, 0.0 }
 0x272   : > { %v1884_v10 = vpop.f32.mrf.mxu0 }
 0x273   : > { %v3622_v38 = vadd.f32 %v3597_v31, %v1884_v10 }
 0x275   : > { %1924 = vmax.xlane.f32.xlu2 %v3622_v38  ;;  %v2130_v61 = vsel %vm2116_vm11, %v3622_v38, 0.0 }
 0x27a   : > { %v1887_v39 = vpop.f32.mrf.mxu0 }
 0x27b   : > { %v3626_v26 = vadd.f32 %v3597_v31, %v1887_v39 }
 0x27d   : > { %1926 = vmax.xlane.f32.xlu2 %v3626_v26  ;;  %v2131_v21 = vsel %vm2117_vm12, %v3626_v26, 0.0 }
 0x282   : > { %v1890_v33 = vpop.f32.mrf.mxu0 }
 0x283   : > { %v3630_v62 = vadd.f32 %v3597_v31, %v1890_v33 }
 0x285   : > { %1928 = vmax.xlane.f32.xlu0 %v3630_v62  ;;  %v2132_v54 = vsel %vm2118_vm15, %v3630_v62, 0.0 }
 0x28a   : > { %v1893_v14 = vpop.f32.mrf.mxu0 }
 0x28b   : > { %v3634_v59 = vadd.f32 %v3597_v31, %v1893_v14 }
 0x28d   : > { %1930 = vmax.xlane.f32.xlu1 %v3634_v59  ;;  %v2133_v63 = vsel %vm2119_vm13, %v3634_v59, 0.0 }
 0x292   : > { %v1896_v37 = vpop.f32.mrf.mxu0 }
 0x293   : > { %v3638_v40 = vadd.f32 %v3597_v31, %v1896_v37 }
 0x295   : > { %1932 = vmax.xlane.f32.xlu2 %v3638_v40  ;;  %v2134_v4 = vsel %vm2120_vm3, %v3638_v40, 0.0 }
 0x29a   : > { %v1899_v46 = vpop.f32.mrf.mxu0 }
 0x29b   : > { %v3642_v50 = vadd.f32 %v3597_v31, %v1899_v46 }
 0x29d   : > { %1934 = vmax.xlane.f32.xlu0 %v3642_v50 }
 0x2a2   : > { %v1902_v47 = vpop.f32.mrf.mxu0 }
 0x2a3   : > { %v3646_v48 = vadd.f32 %v3597_v31, %v1902_v47 }
 0x2a5   : > { %1936 = vmax.xlane.f32.xlu1 %v3646_v48 }
 0x2aa   : > { %v1905_v51 = vpop.f32.mrf.mxu0 }
 0x2ab   : > { %v3650_v20 = vadd.f32 %v3597_v31, %v1905_v51 }
 0x2ad   : > { %1938 = vmax.xlane.f32.xlu2 %v3650_v20 }
 0x2b2   : > { %v1908_v35 = vpop.f32.mrf.mxu0 }
 0x2b3   : > { %v3655_v42 = vadd.f32 %v3597_v31, %v1908_v35 }
 0x2b5   : > { %2148 = vadd.xlane.f32.xlu2 %v2130_v61  ;;  %1940 = vmax.xlane.f32.xlu0 %v3655_v42  ;;  %v2138_v28 = vsel %vm2124_vm2, %v3655_v42, 0.0 }
 0x2ba   : > { %v1911_v18 = vpop.f32.mrf.mxu0 }
 0x2bb   : > { %v3664_v58 = vadd.f32 %v3597_v31, %v1911_v18 }
 0x2bd   : > { %2154 = vadd.xlane.f32.xlu2 %v2133_v63  ;;  %2150 = vadd.xlane.f32.xlu0 %v2131_v21  ;;  %v2139_v32 = vsel %vm2125_vm4, %v3664_v58, 0.0 }
 0x2be   : > { %1942 = vmax.xlane.f32.xlu1 %v3664_v58 }
 0x2c6   : > { %2146 = vadd.xlane.f32.xlu1 %v2129_v36 }
 0x2c8   : > { %v3677_v60 = vpop.xlane.xlu0 %1916 }
 0x2c9   : > { %v1944_v56 = vsub.f32 %v3601_v3, %v3677_v60  ;;  %v3685_v5 = vpop.xlane.xlu1 %2140 }
 0x2cb   : > { %v1958_v55 = vmul.f32 1.442695, %v1944_v56 }
 0x2cd   : > { %2384 = vpow2.f32 %v1958_v55 }
 0x2ce   : > { %2152 = vadd.xlane.f32.xlu1 %v2132_v54 }
 0x2d0   : > { %v3687_v6 = vpop.xlane.xlu0 %1918 }
 0x2d1   : > { %v1945_v13 = vsub.f32 %v3606_v15, %v3687_v6 }
 0x2d3   : > { %v2385_v52 = vpop.eup %2384  ;;  %v1960_v12 = vmul.f32 1.442695, %v1945_v13 }
 0x2d4   : > { %1986 = vadd.xlane.f32.xlu2 %v2385_v52 }
 0x2d5   : > { %2386 = vpow2.f32 %v1960_v12 }
 0x2d8   : > { %v3693_v27 = vpop.xlane.xlu1 %1920  ;;  %v3707_v16 = vpop.xlane.xlu0 %2142 }
 0x2d9   : > { %v1946_v41 = vsub.f32 %v3612_v30, %v3693_v27  ;;  %v3697_v31 = vpop.xlane.xlu2 %2144 }
 0x2db   : > { %v2387_v49 = vpop.eup %2386  ;;  %v1962_v53 = vmul.f32 1.442695, %v1946_v41 }
 0x2dc   : > { %1988 = vadd.xlane.f32.xlu0 %v2387_v49 }
 0x2dd   : > { %2388 = vpow2.f32 %v1962_v53 }
 0x2e0   : > { %v3699_v25 = vpop.xlane.xlu1 %1922 }
 0x2e1   : > { %v1947_v1 = vsub.f32 %v3618_v29, %v3699_v25 }
 0x2e3   : > { %v2389_v17 = vpop.eup %2388  ;;  %v1964_v9 = vmul.f32 1.442695, %v1947_v1 }
 0x2e4   : > { %1990 = vadd.xlane.f32.xlu1 %v2389_v17 }
 0x2e5   : > { %2390 = vpow2.f32 %v1964_v9 }
 0x2e8   : > { %v3703_v24 = vpop.xlane.xlu2 %1924 }
 0x2e9   : > { %v1948_v44 = vsub.f32 %v3622_v38, %v3703_v24 }
 0x2eb   : > { %v2391_v34 = vpop.eup %2390  ;;  %v1966_v11 = vmul.f32 1.442695, %v1948_v44 }
 0x2ec   : > { %1992 = vadd.xlane.f32.xlu2 %v2391_v34 }
 0x2ed   : > { %2392 = vpow2.f32 %v1966_v11 }
 0x2f0   : > { %v3709_v8 = vpop.xlane.xlu2 %1926 }
 0x2f1   : > { %v1949_v10 = vsub.f32 %v3626_v26, %v3709_v8 }
 0x2f3   : > { %v2393_v39 = vpop.eup %2392  ;;  %v1968_v33 = vmul.f32 1.442695, %v1949_v10  ;;  %v2135_v10 = vsel %vm2121_vm0, %v3642_v50, 0.0 }
 0x2f4   : > { %1994 = vadd.xlane.f32.xlu0 %v2393_v39 }
 0x2f5   : > { %2394 = vpow2.f32 %v1968_v33 }
 0x2f8   : > { %v3713_v14 = vpop.xlane.xlu0 %1928 }
 0x2f9   : > { %v1950_v37 = vsub.f32 %v3630_v62, %v3713_v14 }
 0x2fb   : > { %v2395_v46 = vpop.eup %2394  ;;  %v1970_v47 = vmul.f32 1.442695, %v1950_v37  ;;  %v2136_v37 = vsel %vm2122_vm1, %v3646_v48, 0.0 }
 0x2fc   : > { %1996 = vadd.xlane.f32.xlu1 %v2395_v46 }
 0x2fd   : > { %2396 = vpow2.f32 %v1970_v47 }
 0x300   : > { %v3717_v45 = vpop.xlane.xlu1 %1930 }
 0x301   : > { %v1951_v51 = vsub.f32 %v3634_v59, %v3717_v45 }
 0x303   : > { %v2397_v23 = vpop.eup %2396  ;;  %v1972_v7 = vmul.f32 1.442695, %v1951_v51 }
 0x304   : > { %1998 = vadd.xlane.f32.xlu2 %v2397_v23 }
 0x305   : > { %2398 = vpow2.f32 %v1972_v7 }
 0x308   : > { %v3721_v35 = vpop.xlane.xlu2 %1932 }
 0x309   : > { %v1952_v57 = vsub.f32 %v3638_v40, %v3721_v35 }
 0x30b   : > { %v2399_v61 = vpop.eup %2398  ;;  %v1974_v22 = vmul.f32 1.442695, %v1952_v57  ;;  %v2137_v57 = vsel %vm2123_vm5, %v3650_v20, 0.0 }
 0x30c   : > { %2000 = vadd.xlane.f32.xlu0 %v2399_v61 }
 0x30d   : > { %2400 = vpow2.f32 %v1974_v22 }
 0x310   : > { %v3725_v18 = vpop.xlane.xlu0 %1934 }
 0x311   : > { %v1953_v63 = vsub.f32 %v3642_v50, %v3725_v18 }
 0x313   : > { %v2401_v21 = vpop.eup %2400  ;;  %v1976_v36 = vmul.f32 1.442695, %v1953_v63 }
 0x314   : > { %2002 = vadd.xlane.f32.xlu1 %v2401_v21 }
 0x315   : > { %2402 = vpow2.f32 %v1976_v36 }
 0x318   : > { %v3729_v56 = vpop.xlane.xlu1 %1936 }
 0x319   : > { %v1954_v55 = vsub.f32 %v3646_v48, %v3729_v56 }
 0x31b   : > { %v2403_v54 = vpop.eup %2402  ;;  %v1978_v13 = vmul.f32 1.442695, %v1954_v55 }
 0x31c   : > { %2004 = vadd.xlane.f32.xlu2 %v2403_v54 }
 0x31d   : > { %2404 = vpow2.f32 %v1978_v13 }
 0x320   : > { %v3733_v52 = vpop.xlane.xlu2 %1938 }
 0x321   : > { %v1955_v12 = vsub.f32 %v3650_v20, %v3733_v52 }
 0x323   : > { %v2405_v41 = vpop.eup %2404  ;;  %v1980_v49 = vmul.f32 1.442695, %v1955_v12 }
 0x324   : > { %2006 = vadd.xlane.f32.xlu0 %v2405_v41 }
 0x325   : > { %2406 = vpow2.f32 %v1980_v49 }
 0x328   : > { %v3737_v53 = vpop.xlane.xlu0 %1940  ;;  %v3748_v33 = vpop.xlane.xlu2 %2148 }
 0x329   : > { %v1956_v1 = vsub.f32 %v3655_v42, %v3737_v53 }
 0x32b   : > { %v2407_v17 = vpop.eup %2406  ;;  %v1982_v9 = vmul.f32 1.442695, %v1956_v1 }
 0x32c   : > { %2008 = vadd.xlane.f32.xlu1 %v2407_v17 }
 0x32d   : > { %2408 = vpow2.f32 %v1982_v9 }
 0x330   : > { %v3756_v47 = vpop.xlane.xlu2 %2154  ;;  %v2151_v23 = vpop.xlane.xlu0 %2150 }
 0x331   : > { %v3743_v44 = vpop.xlane.xlu1 %1942 }
 0x332   : > { %v1957_v34 = vsub.f32 %v3664_v58, %v3743_v44 }
 0x333   : > { %v2409_v11 = vpop.eup %2408 }
 0x334   : > { %v1984_v39 = vmul.f32 1.442695, %v1957_v34  ;;  %2158 = vadd.xlane.f32.xlu1 %v2135_v10  ;;  %2010 = vadd.xlane.f32.xlu2 %v2409_v11 }
 0x336   : > { %2410 = vpow2.f32 %v1984_v39 }
 0x339   : > { %v2147_v51 = vpop.xlane.xlu1 %2146 }
 0x33c   : > { %v2411_v46 = vpop.eup %2410  ;;  %2164 = vadd.xlane.f32.xlu1 %v2138_v28  ;;  %2160 = vadd.xlane.f32.xlu2 %v2136_v37 }
 0x33d   : > { %2012 = vadd.xlane.f32.xlu0 %v2411_v46 }
 0x341   : > { %v2153_v61 = vpop.xlane.xlu1 %2152 }
 0x344   : > { %2166 = vadd.xlane.f32.xlu2 %v2139_v32 }
 0x345   : > { %2156 = vadd.xlane.f32.xlu0 %v2134_v4 }
 0x347   : > { %v1987_v7 = vpop.xlane.xlu2 %1986 }
 0x348   : > { %2412 = vlog2.f32 %v1987_v7 }
 0x34d   : > { %2162 = vadd.xlane.f32.xlu0 %v2137_v57 }
 0x34e   : > { %v2413_v2 = vpop.eup %2412 }
 0x34f   : > { %v2015_v19 = vmul.f32 0.6931472, %v2413_v2  ;;  %v1989_v22 = vpop.xlane.xlu0 %1988 }
 0x350   : > { %2414 = vlog2.f32 %v1989_v22 }
 0x351   : > { %v2042_v63 = vadd.f32 %v2015_v19, %v3677_v60 }
 0x353   : > { %v2168_v43 = vsub.f32 %v2042_v63, %v3685_v5 }
 0x355   : > { %v2183_v21 = vsel %vm2182_vm6, %v2168_v43, %v3601_v3 }
 0x356   : > { %v2415_v36 = vpop.eup %2414  ;;  %2197 = vst [vmem:[%s3773_s19] sm:$0xff] %v2183_v21 }
 0x357   : > { %v2017_v55 = vmul.f32 0.6931472, %v2415_v36  ;;  %v1991_v60 = vpop.xlane.xlu1 %1990 }
 0x358   : > { %2416 = vlog2.f32 %v1991_v60 }
 0x359   : > { %v2043_v54 = vadd.f32 %v2017_v55, %v3687_v6 }
 0x35b   : > { %v2169_v13 = vsub.f32 %v2043_v54, %v3707_v16 }
 0x35d   : > { %v2184_v12 = vsel %vm2182_vm6, %v2169_v13, %v3606_v15 }
 0x35e   : > { %v2417_v41 = vpop.eup %2416  ;;  %2198 = vst [vmem:[%s3773_s19 + $0x8] sm:$0xff] %v2184_v12 }
 0x35f   : > { %v2019_v5 = vmul.f32 0.6931472, %v2417_v41  ;;  %v1993_v49 = vpop.xlane.xlu2 %1992 }
 0x360   : > { %2418 = vlog2.f32 %v1993_v49 }
 0x361   : > { %v2044_v3 = vadd.f32 %v2019_v5, %v3693_v27 }
 0x363   : > { %v2170_v1 = vsub.f32 %v2044_v3, %v3697_v31 }
 0x365   : > { %v2185_v6 = vsel %vm2182_vm6, %v2170_v1, %v3612_v30 }
 0x366   : > { %v2419_v17 = vpop.eup %2418  ;;  %2199 = vst [vmem:[%s3773_s19 + $0x10] sm:$0xff] %v2185_v6 }
 0x367   : > { %v2021_v16 = vmul.f32 0.6931472, %v2419_v17  ;;  %v1995_v9 = vpop.xlane.xlu0 %1994 }
 0x368   : > { %2420 = vlog2.f32 %v1995_v9 }
 0x369   : > { %v2045_v15 = vadd.f32 %v2021_v16, %v3699_v25 }
 0x36b   : > { %v2171_v34 = vsub.f32 %v2045_v15, %v2147_v51 }
 0x36d   : > { %v2186_v11 = vsel %vm2182_vm6, %v2171_v34, %v3618_v29 }
 0x36e   : > { %v2421_v27 = vpop.eup %2420  ;;  %2200 = vst [vmem:[%s3773_s19 + $0x18] sm:$0xff] %v2186_v11 }
 0x36f   : > { %v2023_v31 = vmul.f32 0.6931472, %v2421_v27  ;;  %v1997_v10 = vpop.xlane.xlu1 %1996 }
 0x370   : > { %2422 = vlog2.f32 %v1997_v10 }
 0x371   : > { %v2046_v30 = vadd.f32 %v2023_v31, %v3703_v24 }
 0x373   : > { %v2172_v39 = vsub.f32 %v2046_v30, %v3748_v33 }
 0x375   : > { %v2187_v28 = vsel %vm2182_vm6, %v2172_v39, %v3622_v38 }
 0x376   : > { %v2423_v25 = vpop.eup %2422  ;;  %2201 = vst [vmem:[%s3773_s19 + $0x20] sm:$0xff] %v2187_v28 }
 0x377   : > { %v2025_v37 = vmul.f32 0.6931472, %v2423_v25  ;;  %v1999_v46 = vpop.xlane.xlu2 %1998 }
 0x378   : > { %2424 = vlog2.f32 %v1999_v46 }
 0x379   : > { %v2047_v29 = vadd.f32 %v2025_v37, %v3709_v8 }
 0x37b   : > { %v2173_v32 = vsub.f32 %v2047_v29, %v2151_v23 }
 0x37d   : > { %v2188_v24 = vsel %vm2182_vm6, %v2173_v32, %v3626_v26 }
 0x37e   : > { %v2425_v4 = vpop.eup %2424  ;;  %2202 = vst [vmem:[%s3773_s19 + $0x28] sm:$0xff] %v2188_v24 }
 0x37f   : > { %v2027_v33 = vmul.f32 0.6931472, %v2425_v4  ;;  %v2001_v51 = vpop.xlane.xlu0 %2000 }
 0x380   : > { %2426 = vlog2.f32 %v2001_v51 }
 0x381   : > { %v2048_v38 = vadd.f32 %v2027_v33, %v3713_v14 }
 0x383   : > { %v2174_v7 = vsub.f32 %v2048_v38, %v2153_v61 }
 0x385   : > { %v2189_v57 = vsel %vm2182_vm6, %v2174_v7, %v3630_v62 }
 0x386   : > { %v2427_v2 = vpop.eup %2426  ;;  %2203 = vst [vmem:[%s3773_s19 + $0x30] sm:$0xff] %v2189_v57 }
 0x387   : > { %v2029_v8 = vmul.f32 0.6931472, %v2427_v2  ;;  %v2003_v63 = vpop.xlane.xlu1 %2002 }
 0x389   : > { %v2049_v23 = vadd.f32 %v2029_v8, %v3717_v45 }
 0x38b   : > { %v2175_v19 = vsub.f32 %v2049_v23, %v3756_v47 }
 0x38d   : > { %v2190_v26 = vsel %vm2182_vm6, %v2175_v19, %v3634_v59 }
 0x38e   : > { %2204 = vst [vmem:[%s3773_s19 + $0x38] sm:$0xff] %v2190_v26 }
 0x38f   : > { %v2005_v22 = vpop.xlane.xlu2 %2004 }
 0x390   : > { %2428 = vlog2.f32 %v2005_v22 }
 0x396   : > { %v2429_v61 = vpop.eup %2428 }
 0x397   : > { %v2007_v14 = vpop.xlane.xlu0 %2006  ;;  %v2033_v62 = vmul.f32 0.6931472, %v2429_v61 }
 0x398   : > { %2430 = vlog2.f32 %v2007_v14 }
 0x399   : > { %v2051_v21 = vadd.f32 %v2033_v62, %v3725_v18 }
 0x39e   : > { %v2431_v36 = vpop.eup %2430 }
 0x39f   : > { %v2009_v43 = vpop.xlane.xlu1 %2008  ;;  %v2035_v60 = vmul.f32 0.6931472, %v2431_v36 }
 0x3a1   : > { %v2052_v13 = vadd.f32 %v2035_v60, %v3729_v56 }
 0x3a7   : > { %v2011_v45 = vpop.xlane.xlu2 %2010  ;;  %v2159_v55 = vpop.xlane.xlu1 %2158 }
 0x3a8   : > { %2432 = vlog2.f32 %v2011_v45  ;;  %v2177_v47 = vsub.f32 %v2051_v21, %v2159_v55 }
 0x3a9   : > { %2434 = vlog2.f32 %v2003_v63 }
 0x3aa   : > { %v2192_v59 = vsel %vm2182_vm6, %v2177_v47, %v3642_v50 }
 0x3ab   : > { %2206 = vst [vmem:[%s3773_s19 + $0x48] sm:$0xff] %v2192_v59 }
 0x3ae   : > { %v2433_v54 = vpop.eup %2432 }
 0x3af   : > { %v2039_v12 = vmul.f32 0.6931472, %v2433_v54  ;;  %v2161_v41 = vpop.xlane.xlu2 %2160  ;;  %v2435_v18 = vpop.eup %2434 }
 0x3b0   : > { %v2178_v5 = vsub.f32 %v2052_v13, %v2161_v41  ;;  %v2013_v49 = vpop.xlane.xlu0 %2012  ;;  %v2165_v6 = vpop.xlane.xlu1 %2164  ;;  %v2031_v50 = vmul.f32 0.6931472, %v2435_v18 }
 0x3b1   : > { %2436 = vlog2.f32 %v2013_v49  ;;  %v2054_v3 = vadd.f32 %v2039_v12, %v3737_v53 }
 0x3b2   : > { %2438 = vlog2.f32 %v2009_v43  ;;  %v2193_v1 = vsel %vm2182_vm6, %v2178_v5, %v3646_v48  ;;  %v2050_v9 = vadd.f32 %v2031_v50, %v3721_v35 }
 0x3b3   : > { %2207 = vst [vmem:[%s3773_s19 + $0x50] sm:$0xff] %v2193_v1  ;;  %v2180_v17 = vsub.f32 %v2054_v3, %v2165_v6 }
 0x3b5   : > { %v2195_v56 = vsel %vm2182_vm6, %v2180_v17, %v3655_v42 }
 0x3b6   : > { %2209 = vst [vmem:[%s3773_s19 + $0x60] sm:$0xff] %v2195_v56 }
 0x3b7   : > { %v2437_v16 = vpop.eup %2436  ;;  %v2167_v31 = vpop.xlane.xlu2 %2166 }
 0x3b8   : > { %v2439_v53 = vpop.eup %2438  ;;  %v2041_v15 = vmul.f32 0.6931472, %v2437_v16  ;;  %v2157_v34 = vpop.xlane.xlu0 %2156 }
 0x3b9   : > { %v2176_v11 = vsub.f32 %v2050_v9, %v2157_v34  ;;  %v2037_v27 = vmul.f32 0.6931472, %v2439_v53 }
 0x3ba   : > { %v2055_v48 = vadd.f32 %v2041_v15, %v3743_v44 }
 0x3bb   : > { %v2191_v10 = vsel %vm2182_vm6, %v2176_v11, %v3638_v40  ;;  %v2053_v35 = vadd.f32 %v2037_v27, %v3733_v52 }
 0x3bc   : > { %v2181_v30 = vsub.f32 %v2055_v48, %v2167_v31  ;;  %2205 = vst [vmem:[%s3773_s19 + $0x40] sm:$0xff] %v2191_v10 }
 0x3be   : > { %v2196_v42 = vsel %vm2182_vm6, %v2181_v30, %v3664_v58 }
 0x3bf   : > { %2210 = vst [vmem:[%s3773_s19 + $0x68] sm:$0xff] %v2196_v42 }
 0x3c0   : > { %v2163_v39 = vpop.xlane.xlu0 %2162 }
 0x3c1   : > { %v2179_v28 = vsub.f32 %v2053_v35, %v2163_v39 }
 0x3c3   : > { %v2194_v44 = vsel %vm2182_vm6, %v2179_v28, %v3650_v20 }
 0x3c4   : > { %2208 = vst [vmem:[%s3773_s19 + $0x58] sm:$0xff] %v2194_v44 }
 0x3c5 PF: > { %s26_s21 = sadd.s32 1, %s2446_s21  }
 0x3c6   : > { %p23_p4 = scmp.ge.s32.totalorder %s26_s21, 4  }
 0x3c8   :  { %25 = sbr.rel (!%p23_p4) target bundleno = 2 (0x2), region = 123 }

</bundles_post_ra>
